<compile_context>
chip_gen: v5e
topology: v5e:2x2
jax: 0.10.0
libtpu: 0.0.40
codegen_flags: <defaults>
</compile_context>

<pallas_src>
import jax
import jax.numpy as jnp
from jax.experimental import pallas as pl
from jax.experimental.pallas import tpu as pltpu

EPS = 1e-5
KH = KW = 3

G = 6                       # conv groups
C_IN = 720                  # total channels (in == out)
CPG = C_IN // G             # 120 channels per group (in and out)
CPAD = 128                  # lane-aligned padded per-group channels

H = W = 14                  # spatial size
WPAD = W + 2                # 16  (1 left + 1 right zero column)
HPAD = H + 3                # 17  (1 top + 2 bottom zero rows so all 9 tap slices fit)
ROWS_IN = HPAD * WPAD       # 272 flattened padded-input rows per group
ROWS_OUT = H * WPAD         # 224 flattened output rows per group (cols 14,15 garbage)
N_VALID = H * W             # 196 valid spatial positions per group


def _fused_group_kernel(x_ref, w_ref, g_ref, b_ref, o_ref):
    # x_ref : (272, 128)      flattened zero-padded input slab for this group
    # w_ref : (54, 128, 128)  all groups' 3x3 taps, VMEM-resident across the grid
    # g_ref : (1, 1, 128)     BN gamma (zero-padded past 120)
    # b_ref : (1, 1, 128)     BN beta  (zero-padded past 120)
    # o_ref : (224, 128)      flattened 14x16 output rows (cols 14,15 are scratch)
    g = pl.program_id(0)

    acc = jnp.zeros((ROWS_OUT, CPAD), jnp.float32)
    for ky in range(KH):
        for kx in range(KW):
            off = ky * WPAD + kx                                  # static sublane offset
            patch = jnp.maximum(x_ref[off:off + ROWS_OUT, :], 0.0)  # fused leading ReLU
            acc = acc + jnp.dot(
                patch,
                w_ref[g * (KH * KW) + ky * KW + kx],
                preferred_element_type=jnp.float32,
            )

    # Training-mode BatchNorm: per-channel batch stats over the 196 valid positions
    # (biased variance), garbage columns (r % 16 >= 14) masked out of the statistics.
    col = jax.lax.broadcasted_iota(jnp.int32, (ROWS_OUT, 1), 0) % WPAD
    valid = (col < W).astype(jnp.float32)                         # (224, 1)
    inv_n = 1.0 / float(N_VALID)
    mean = jnp.sum(acc * valid, axis=0, keepdims=True) * inv_n    # (1, 128)
    centered = acc - mean
    var = jnp.sum(jnp.square(centered) * valid, axis=0, keepdims=True) * inv_n
    scale = g_ref[0] * jax.lax.rsqrt(var + EPS)                   # (1, 128), EUP rsqrt
    y = centered * scale + b_ref[0]
    o_ref[...] = jnp.maximum(y, 0.0)                              # lane-dense 128-wide store


def prepare_params(w, gamma, beta):
    """One-time parameter rearrangement (hoisted out of the per-call path)."""
    pad_c = CPAD - CPG
    # w: (720, 120, 3, 3) OIHW -> (G, 3, 3, Cin_g, Cout_g) -> pad channels -> (G*9, 128, 128)
    wg = w.reshape(G, CPG, CPG, KH, KW).transpose(0, 3, 4, 2, 1)
    wg = jnp.pad(wg, ((0, 0), (0, 0), (0, 0), (0, pad_c), (0, pad_c)))
    wg = wg.reshape(G * KH * KW, CPAD, CPAD)
    gg = jnp.pad(gamma.reshape(G, 1, CPG), ((0, 0), (0, 0), (0, pad_c)))
    bg = jnp.pad(beta.reshape(G, 1, CPG), ((0, 0), (0, 0), (0, pad_c)))
    return wg, gg, bg


@jax.jit
def fused_forward(x, wg, gg, bg):
    """x: (1, 720, 14, 14) NCHW float32; wg/gg/bg from prepare_params."""
    pad_c = CPAD - CPG
    xg = x.reshape(G, CPG, H, W).transpose(0, 2, 3, 1)                    # (G,14,14,120)
    xp = jnp.pad(xg, ((0, 0), (1, HPAD - H - 1), (1, 1), (0, pad_c)))     # (G,17,16,128)
    xf = xp.reshape(G * ROWS_IN, CPAD)                                    # (1632, 128)

    out = pl.pallas_call(
        _fused_group_kernel,
        out_shape=jax.ShapeDtypeStruct((G * ROWS_OUT, CPAD), jnp.float32),
        grid=(G,),
        in_specs=[
            pl.BlockSpec((ROWS_IN, CPAD), lambda g: (g, 0)),              # per-group slab
            pl.BlockSpec((G * KH * KW, CPAD, CPAD), lambda g: (0, 0, 0)), # resident weights
            pl.BlockSpec((1, 1, CPAD), lambda g: (g, 0, 0)),              # gamma
            pl.BlockSpec((1, 1, CPAD), lambda g: (g, 0, 0)),              # beta
        ],
        out_specs=pl.BlockSpec((ROWS_OUT, CPAD), lambda g: (g, 0)),
        compiler_params=pltpu.CompilerParams(dimension_semantics=("parallel",)),
    )(xf, wg, gg, bg)

    # Drop the 2 garbage columns and 8 padded channels, then back to NCHW.
    out = out.reshape(G, H, WPAD, CPAD)[:, :, :W, :CPG]                   # (G,14,14,120)
    return out.transpose(0, 3, 1, 2).reshape(1, C_IN, H, W)


def _reference(x, w, gamma, beta):
    xr = jnp.maximum(x, 0.0)
    conv = jax.lax.conv_general_dilated(
        xr, w, window_strides=(1, 1), padding=((1, 1), (1, 1)),
        dimension_numbers=("NCHW", "OIHW", "NCHW"), feature_group_count=G)
    mean = jnp.mean(conv, axis=(0, 2, 3), keepdims=True)
    var = jnp.mean(jnp.square(conv), axis=(0, 2, 3), keepdims=True) - jnp.square(mean)
    y = (conv - mean) * (gamma.reshape(1, -1, 1, 1) * jax.lax.rsqrt(var + EPS)) \
        + beta.reshape(1, -1, 1, 1)
    return jnp.maximum(y, 0.0)


if __name__ == "__main__":
    key = jax.random.PRNGKey(0)
    kx_, kw_, kg_, kb_ = jax.random.split(key, 4)
    x = jax.random.normal(kx_, (1, C_IN, H, W), dtype=jnp.float32)
    w = jax.random.normal(kw_, (C_IN, CPG, KH, KW), dtype=jnp.float32) * 0.05
    gamma = 1.0 + 0.1 * jax.random.normal(kg_, (C_IN,), dtype=jnp.float32)
    beta = 0.1 * jax.random.normal(kb_, (C_IN,), dtype=jnp.float32)

    # One-time (static) parameter prep, outside the per-call path.
    wg, gg, bg = jax.block_until_ready(prepare_params(w, gamma, beta))

    out = jax.block_until_ready(fused_forward(x, wg, gg, bg))
    ref = jax.block_until_ready(_reference(x, w, gamma, beta))

    assert out.shape == (1, C_IN, H, W)
    assert jnp.allclose(out, ref, rtol=1e-3, atol=1e-3), "mismatch vs reference"

    print("KERNEL_OK")
</pallas_src>

<mosaic_0001>
module attributes {stable_mosaic.version = 11 : i64} {
  func.func @_fused_group_kernel(%arg0: i32, %arg1: memref<272x128xf32, #tpu.memory_space<vmem>>, %arg2: memref<54x128x128xf32, #tpu.memory_space<vmem>>, %arg3: memref<1x1x128xf32, #tpu.memory_space<vmem>>, %arg4: memref<1x1x128xf32, #tpu.memory_space<vmem>>, %arg5: memref<224x128xf32, #tpu.memory_space<vmem>>) attributes {dimension_semantics = [#tpu.dimension_semantics<parallel>], iteration_bounds = array<i64: 6>, scalar_prefetch = 0 : i64, scratch_operands = 0 : i64, tpu.core_type = #tpu.core_type<tc>, window_params = [{transform_indices = @transform_0, window_bounds = array<i64: 272, 128>}, {pipeline_mode = #tpu.pipeline_mode<synchronous>, transform_indices = @transform_1, window_bounds = array<i64: 54, 128, 128>}, {transform_indices = @transform_2, window_bounds = array<i64: 1, 1, 128>}, {transform_indices = @transform_3, window_bounds = array<i64: 1, 1, 128>}, {transform_indices = @transform_4, window_bounds = array<i64: 224, 128>}]} {
    %cst = arith.constant 0.000000e+00 : f32
    %0 = vector.broadcast %cst : f32 to vector<224x128xf32>
    %c0 = arith.constant 0 : index
    %c0_0 = arith.constant 0 : index
    %1 = vector.load %arg1[%c0, %c0_0] : memref<272x128xf32, #tpu.memory_space<vmem>>, vector<224x128xf32>
    %cst_1 = arith.constant 0.000000e+00 : f32
    %2 = vector.broadcast %cst_1 : f32 to vector<224x128xf32>
    %3 = arith.maximumf %1, %2 : vector<224x128xf32>
    %c9_i32 = arith.constant 9 : i32
    %4 = arith.muli %arg0, %c9_i32 : i32
    %c0_i32 = arith.constant 0 : i32
    %5 = arith.addi %4, %c0_i32 : i32
    %c0_i32_2 = arith.constant 0 : i32
    %6 = arith.addi %5, %c0_i32_2 : i32
    %7 = arith.index_cast %6 : i32 to index
    %c0_3 = arith.constant 0 : index
    %c0_4 = arith.constant 0 : index
    %8 = vector.load %arg2[%7, %c0_3, %c0_4] : memref<54x128x128xf32, #tpu.memory_space<vmem>>, vector<1x128x128xf32>
    %9 = vector.shape_cast %8 : vector<1x128x128xf32> to vector<128x128xf32>
    %cst_5 = arith.constant dense<0.000000e+00> : vector<224x128xf32>
    %10 = tpu.matmul %3, %9, %cst_5 {dimension_numbers = #tpu.dot_dimension_numbers<[1], [0], [0], [1], [0, 0, 1, 1], [], []>} : vector<224x128xf32>, vector<128x128xf32>, vector<224x128xf32> -> vector<224x128xf32>
    %11 = arith.addf %0, %10 : vector<224x128xf32>
    %c1 = arith.constant 1 : index
    %c0_6 = arith.constant 0 : index
    %12 = vector.load %arg1[%c1, %c0_6] : memref<272x128xf32, #tpu.memory_space<vmem>>, vector<224x128xf32>
    %cst_7 = arith.constant 0.000000e+00 : f32
    %13 = vector.broadcast %cst_7 : f32 to vector<224x128xf32>
    %14 = arith.maximumf %12, %13 : vector<224x128xf32>
    %c9_i32_8 = arith.constant 9 : i32
    %15 = arith.muli %arg0, %c9_i32_8 : i32
    %c0_i32_9 = arith.constant 0 : i32
    %16 = arith.addi %15, %c0_i32_9 : i32
    %c1_i32 = arith.constant 1 : i32
    %17 = arith.addi %16, %c1_i32 : i32
    %18 = arith.index_cast %17 : i32 to index
    %c0_10 = arith.constant 0 : index
    %c0_11 = arith.constant 0 : index
    %19 = vector.load %arg2[%18, %c0_10, %c0_11] : memref<54x128x128xf32, #tpu.memory_space<vmem>>, vector<1x128x128xf32>
    %20 = vector.shape_cast %19 : vector<1x128x128xf32> to vector<128x128xf32>
    %cst_12 = arith.constant dense<0.000000e+00> : vector<224x128xf32>
    %21 = tpu.matmul %14, %20, %cst_12 {dimension_numbers = #tpu.dot_dimension_numbers<[1], [0], [0], [1], [0, 0, 1, 1], [], []>} : vector<224x128xf32>, vector<128x128xf32>, vector<224x128xf32> -> vector<224x128xf32>
    %22 = arith.addf %11, %21 : vector<224x128xf32>
    %c2 = arith.constant 2 : index
    %c0_13 = arith.constant 0 : index
    %23 = vector.load %arg1[%c2, %c0_13] : memref<272x128xf32, #tpu.memory_space<vmem>>, vector<224x128xf32>
    %cst_14 = arith.constant 0.000000e+00 : f32
    %24 = vector.broadcast %cst_14 : f32 to vector<224x128xf32>
    %25 = arith.maximumf %23, %24 : vector<224x128xf32>
    %c9_i32_15 = arith.constant 9 : i32
    %26 = arith.muli %arg0, %c9_i32_15 : i32
    %c0_i32_16 = arith.constant 0 : i32
    %27 = arith.addi %26, %c0_i32_16 : i32
    %c2_i32 = arith.constant 2 : i32
    %28 = arith.addi %27, %c2_i32 : i32
    %29 = arith.index_cast %28 : i32 to index
    %c0_17 = arith.constant 0 : index
    %c0_18 = arith.constant 0 : index
    %30 = vector.load %arg2[%29, %c0_17, %c0_18] : memref<54x128x128xf32, #tpu.memory_space<vmem>>, vector<1x128x128xf32>
    %31 = vector.shape_cast %30 : vector<1x128x128xf32> to vector<128x128xf32>
    %cst_19 = arith.constant dense<0.000000e+00> : vector<224x128xf32>
    %32 = tpu.matmul %25, %31, %cst_19 {dimension_numbers = #tpu.dot_dimension_numbers<[1], [0], [0], [1], [0, 0, 1, 1], [], []>} : vector<224x128xf32>, vector<128x128xf32>, vector<224x128xf32> -> vector<224x128xf32>
    %33 = arith.addf %22, %32 : vector<224x128xf32>
    %c16 = arith.constant 16 : index
    %c0_20 = arith.constant 0 : index
    %34 = vector.load %arg1[%c16, %c0_20] : memref<272x128xf32, #tpu.memory_space<vmem>>, vector<224x128xf32>
    %cst_21 = arith.constant 0.000000e+00 : f32
    %35 = vector.broadcast %cst_21 : f32 to vector<224x128xf32>
    %36 = arith.maximumf %34, %35 : vector<224x128xf32>
    %c9_i32_22 = arith.constant 9 : i32
    %37 = arith.muli %arg0, %c9_i32_22 : i32
    %c3_i32 = arith.constant 3 : i32
    %38 = arith.addi %37, %c3_i32 : i32
    %c0_i32_23 = arith.constant 0 : i32
    %39 = arith.addi %38, %c0_i32_23 : i32
    %40 = arith.index_cast %39 : i32 to index
    %c0_24 = arith.constant 0 : index
    %c0_25 = arith.constant 0 : index
    %41 = vector.load %arg2[%40, %c0_24, %c0_25] : memref<54x128x128xf32, #tpu.memory_space<vmem>>, vector<1x128x128xf32>
    %42 = vector.shape_cast %41 : vector<1x128x128xf32> to vector<128x128xf32>
    %cst_26 = arith.constant dense<0.000000e+00> : vector<224x128xf32>
    %43 = tpu.matmul %36, %42, %cst_26 {dimension_numbers = #tpu.dot_dimension_numbers<[1], [0], [0], [1], [0, 0, 1, 1], [], []>} : vector<224x128xf32>, vector<128x128xf32>, vector<224x128xf32> -> vector<224x128xf32>
    %44 = arith.addf %33, %43 : vector<224x128xf32>
    %c17 = arith.constant 17 : index
    %c0_27 = arith.constant 0 : index
    %45 = vector.load %arg1[%c17, %c0_27] : memref<272x128xf32, #tpu.memory_space<vmem>>, vector<224x128xf32>
    %cst_28 = arith.constant 0.000000e+00 : f32
    %46 = vector.broadcast %cst_28 : f32 to vector<224x128xf32>
    %47 = arith.maximumf %45, %46 : vector<224x128xf32>
    %c9_i32_29 = arith.constant 9 : i32
    %48 = arith.muli %arg0, %c9_i32_29 : i32
    %c3_i32_30 = arith.constant 3 : i32
    %49 = arith.addi %48, %c3_i32_30 : i32
    %c1_i32_31 = arith.constant 1 : i32
    %50 = arith.addi %49, %c1_i32_31 : i32
    %51 = arith.index_cast %50 : i32 to index
    %c0_32 = arith.constant 0 : index
    %c0_33 = arith.constant 0 : index
    %52 = vector.load %arg2[%51, %c0_32, %c0_33] : memref<54x128x128xf32, #tpu.memory_space<vmem>>, vector<1x128x128xf32>
    %53 = vector.shape_cast %52 : vector<1x128x128xf32> to vector<128x128xf32>
    %cst_34 = arith.constant dense<0.000000e+00> : vector<224x128xf32>
    %54 = tpu.matmul %47, %53, %cst_34 {dimension_numbers = #tpu.dot_dimension_numbers<[1], [0], [0], [1], [0, 0, 1, 1], [], []>} : vector<224x128xf32>, vector<128x128xf32>, vector<224x128xf32> -> vector<224x128xf32>
    %55 = arith.addf %44, %54 : vector<224x128xf32>
    %c18 = arith.constant 18 : index
    %c0_35 = arith.constant 0 : index
    %56 = vector.load %arg1[%c18, %c0_35] : memref<272x128xf32, #tpu.memory_space<vmem>>, vector<224x128xf32>
    %cst_36 = arith.constant 0.000000e+00 : f32
    %57 = vector.broadcast %cst_36 : f32 to vector<224x128xf32>
    %58 = arith.maximumf %56, %57 : vector<224x128xf32>
    %c9_i32_37 = arith.constant 9 : i32
    %59 = arith.muli %arg0, %c9_i32_37 : i32
    %c3_i32_38 = arith.constant 3 : i32
    %60 = arith.addi %59, %c3_i32_38 : i32
    %c2_i32_39 = arith.constant 2 : i32
    %61 = arith.addi %60, %c2_i32_39 : i32
    %62 = arith.index_cast %61 : i32 to index
    %c0_40 = arith.constant 0 : index
    %c0_41 = arith.constant 0 : index
    %63 = vector.load %arg2[%62, %c0_40, %c0_41] : memref<54x128x128xf32, #tpu.memory_space<vmem>>, vector<1x128x128xf32>
    %64 = vector.shape_cast %63 : vector<1x128x128xf32> to vector<128x128xf32>
    %cst_42 = arith.constant dense<0.000000e+00> : vector<224x128xf32>
    %65 = tpu.matmul %58, %64, %cst_42 {dimension_numbers = #tpu.dot_dimension_numbers<[1], [0], [0], [1], [0, 0, 1, 1], [], []>} : vector<224x128xf32>, vector<128x128xf32>, vector<224x128xf32> -> vector<224x128xf32>
    %66 = arith.addf %55, %65 : vector<224x128xf32>
    %c32 = arith.constant 32 : index
    %c0_43 = arith.constant 0 : index
    %67 = vector.load %arg1[%c32, %c0_43] : memref<272x128xf32, #tpu.memory_space<vmem>>, vector<224x128xf32>
    %cst_44 = arith.constant 0.000000e+00 : f32
    %68 = vector.broadcast %cst_44 : f32 to vector<224x128xf32>
    %69 = arith.maximumf %67, %68 : vector<224x128xf32>
    %c9_i32_45 = arith.constant 9 : i32
    %70 = arith.muli %arg0, %c9_i32_45 : i32
    %c6_i32 = arith.constant 6 : i32
    %71 = arith.addi %70, %c6_i32 : i32
    %c0_i32_46 = arith.constant 0 : i32
    %72 = arith.addi %71, %c0_i32_46 : i32
    %73 = arith.index_cast %72 : i32 to index
    %c0_47 = arith.constant 0 : index
    %c0_48 = arith.constant 0 : index
    %74 = vector.load %arg2[%73, %c0_47, %c0_48] : memref<54x128x128xf32, #tpu.memory_space<vmem>>, vector<1x128x128xf32>
    %75 = vector.shape_cast %74 : vector<1x128x128xf32> to vector<128x128xf32>
    %cst_49 = arith.constant dense<0.000000e+00> : vector<224x128xf32>
    %76 = tpu.matmul %69, %75, %cst_49 {dimension_numbers = #tpu.dot_dimension_numbers<[1], [0], [0], [1], [0, 0, 1, 1], [], []>} : vector<224x128xf32>, vector<128x128xf32>, vector<224x128xf32> -> vector<224x128xf32>
    %77 = arith.addf %66, %76 : vector<224x128xf32>
    %c33 = arith.constant 33 : index
    %c0_50 = arith.constant 0 : index
    %78 = vector.load %arg1[%c33, %c0_50] : memref<272x128xf32, #tpu.memory_space<vmem>>, vector<224x128xf32>
    %cst_51 = arith.constant 0.000000e+00 : f32
    %79 = vector.broadcast %cst_51 : f32 to vector<224x128xf32>
    %80 = arith.maximumf %78, %79 : vector<224x128xf32>
    %c9_i32_52 = arith.constant 9 : i32
    %81 = arith.muli %arg0, %c9_i32_52 : i32
    %c6_i32_53 = arith.constant 6 : i32
    %82 = arith.addi %81, %c6_i32_53 : i32
    %c1_i32_54 = arith.constant 1 : i32
    %83 = arith.addi %82, %c1_i32_54 : i32
    %84 = arith.index_cast %83 : i32 to index
    %c0_55 = arith.constant 0 : index
    %c0_56 = arith.constant 0 : index
    %85 = vector.load %arg2[%84, %c0_55, %c0_56] : memref<54x128x128xf32, #tpu.memory_space<vmem>>, vector<1x128x128xf32>
    %86 = vector.shape_cast %85 : vector<1x128x128xf32> to vector<128x128xf32>
    %cst_57 = arith.constant dense<0.000000e+00> : vector<224x128xf32>
    %87 = tpu.matmul %80, %86, %cst_57 {dimension_numbers = #tpu.dot_dimension_numbers<[1], [0], [0], [1], [0, 0, 1, 1], [], []>} : vector<224x128xf32>, vector<128x128xf32>, vector<224x128xf32> -> vector<224x128xf32>
    %88 = arith.addf %77, %87 : vector<224x128xf32>
    %c34 = arith.constant 34 : index
    %c0_58 = arith.constant 0 : index
    %89 = vector.load %arg1[%c34, %c0_58] : memref<272x128xf32, #tpu.memory_space<vmem>>, vector<224x128xf32>
    %cst_59 = arith.constant 0.000000e+00 : f32
    %90 = vector.broadcast %cst_59 : f32 to vector<224x128xf32>
    %91 = arith.maximumf %89, %90 : vector<224x128xf32>
    %c9_i32_60 = arith.constant 9 : i32
    %92 = arith.muli %arg0, %c9_i32_60 : i32
    %c6_i32_61 = arith.constant 6 : i32
    %93 = arith.addi %92, %c6_i32_61 : i32
    %c2_i32_62 = arith.constant 2 : i32
    %94 = arith.addi %93, %c2_i32_62 : i32
    %95 = arith.index_cast %94 : i32 to index
    %c0_63 = arith.constant 0 : index
    %c0_64 = arith.constant 0 : index
    %96 = vector.load %arg2[%95, %c0_63, %c0_64] : memref<54x128x128xf32, #tpu.memory_space<vmem>>, vector<1x128x128xf32>
    %97 = vector.shape_cast %96 : vector<1x128x128xf32> to vector<128x128xf32>
    %cst_65 = arith.constant dense<0.000000e+00> : vector<224x128xf32>
    %98 = tpu.matmul %91, %97, %cst_65 {dimension_numbers = #tpu.dot_dimension_numbers<[1], [0], [0], [1], [0, 0, 1, 1], [], []>} : vector<224x128xf32>, vector<128x128xf32>, vector<224x128xf32> -> vector<224x128xf32>
    %99 = arith.addf %88, %98 : vector<224x128xf32>
    %100 = tpu.iota {dimensions = array<i32: 0>} : vector<224x1xi32>
    %c16_i32 = arith.constant 16 : i32
    %c0_i32_66 = arith.constant 0 : i32
    %101 = arith.cmpi eq, %c16_i32, %c0_i32_66 : i32
    %c1_i32_67 = arith.constant 1 : i32
    %102 = arith.select %101, %c1_i32_67, %c16_i32 : i32
    %103 = vector.broadcast %102 : i32 to vector<224x1xi32>
    %104 = arith.remsi %100, %103 : vector<224x1xi32>
    %c0_i32_68 = arith.constant 0 : i32
    %105 = vector.broadcast %c0_i32_68 : i32 to vector<224x1xi32>
    %106 = arith.cmpi ne, %104, %105 : vector<224x1xi32>
    %c0_i32_69 = arith.constant 0 : i32
    %107 = vector.broadcast %c0_i32_69 : i32 to vector<224x1xi32>
    %108 = arith.cmpi slt, %104, %107 : vector<224x1xi32>
    %c0_i32_70 = arith.constant 0 : i32
    %109 = arith.cmpi slt, %102, %c0_i32_70 : i32
    %110 = vector.broadcast %109 : i1 to vector<224x1xi1>
    %111 = vector.broadcast %110 : vector<224x1xi1> to vector<224x1xi1>
    %112 = arith.xori %108, %111 : vector<224x1xi1>
    %113 = arith.andi %112, %106 : vector<224x1xi1>
    %114 = vector.broadcast %102 : i32 to vector<224x1xi32>
    %115 = arith.addi %104, %114 : vector<224x1xi32>
    %116 = arith.select %113, %115, %104 : vector<224x1xi1>, vector<224x1xi32>
    %c14_i32 = arith.constant 14 : i32
    %117 = vector.broadcast %c14_i32 : i32 to vector<224x1xi32>
    %118 = arith.cmpi slt, %116, %117 : vector<224x1xi32>
    %119 = arith.extui %118 : vector<224x1xi1> to vector<224x1xi32>
    %120 = arith.sitofp %119 : vector<224x1xi32> to vector<224x1xf32>
    %121 = vector.broadcast %120 : vector<224x1xf32> to vector<224x128xf32>
    %122 = arith.mulf %99, %121 : vector<224x128xf32>
    %cst_71 = arith.constant dense<0.000000e+00> : vector<128xf32>
    %123 = vector.multi_reduction <add>, %122, %cst_71 [0] : vector<224x128xf32> to vector<128xf32>
    %124 = vector.shape_cast %123 : vector<128xf32> to vector<1x128xf32>
    %cst_72 = arith.constant 0.00510204071 : f32
    %125 = vector.broadcast %cst_72 : f32 to vector<1x128xf32>
    %126 = arith.mulf %124, %125 : vector<1x128xf32>
    %127 = vector.broadcast %126 : vector<1x128xf32> to vector<224x128xf32>
    %128 = arith.subf %99, %127 : vector<224x128xf32>
    %129 = arith.mulf %128, %128 : vector<224x128xf32>
    %130 = vector.broadcast %120 : vector<224x1xf32> to vector<224x128xf32>
    %131 = arith.mulf %129, %130 : vector<224x128xf32>
    %cst_73 = arith.constant dense<0.000000e+00> : vector<128xf32>
    %132 = vector.multi_reduction <add>, %131, %cst_73 [0] : vector<224x128xf32> to vector<128xf32>
    %133 = vector.shape_cast %132 : vector<128xf32> to vector<1x128xf32>
    %cst_74 = arith.constant 0.00510204071 : f32
    %134 = vector.broadcast %cst_74 : f32 to vector<1x128xf32>
    %135 = arith.mulf %133, %134 : vector<1x128xf32>
    %c0_75 = arith.constant 0 : index
    %c0_76 = arith.constant 0 : index
    %c0_77 = arith.constant 0 : index
    %136 = vector.load %arg3[%c0_75, %c0_76, %c0_77] : memref<1x1x128xf32, #tpu.memory_space<vmem>>, vector<1x1x128xf32>
    %137 = vector.shape_cast %136 : vector<1x1x128xf32> to vector<1x128xf32>
    %cst_78 = arith.constant 9.99999974E-6 : f32
    %138 = vector.broadcast %cst_78 : f32 to vector<1x128xf32>
    %139 = arith.addf %135, %138 : vector<1x128xf32>
    %140 = math.rsqrt %139 : vector<1x128xf32>
    %141 = arith.mulf %137, %140 : vector<1x128xf32>
    %142 = vector.broadcast %141 : vector<1x128xf32> to vector<224x128xf32>
    %143 = arith.mulf %128, %142 : vector<224x128xf32>
    %c0_79 = arith.constant 0 : index
    %c0_80 = arith.constant 0 : index
    %c0_81 = arith.constant 0 : index
    %144 = vector.load %arg4[%c0_79, %c0_80, %c0_81] : memref<1x1x128xf32, #tpu.memory_space<vmem>>, vector<1x1x128xf32>
    %145 = vector.shape_cast %144 : vector<1x1x128xf32> to vector<1x128xf32>
    %146 = vector.broadcast %145 : vector<1x128xf32> to vector<224x128xf32>
    %147 = arith.addf %143, %146 : vector<224x128xf32>
    %cst_82 = arith.constant 0.000000e+00 : f32
    %148 = vector.broadcast %cst_82 : f32 to vector<224x128xf32>
    %149 = arith.maximumf %147, %148 : vector<224x128xf32>
    %c0_83 = arith.constant 0 : index
    %c0_84 = arith.constant 0 : index
    %150 = vector.load %arg5[%c0_83, %c0_84] : memref<224x128xf32, #tpu.memory_space<vmem>>, vector<224x128xf32>
    tpu.vector_store %arg5[%c0_83, %c0_84], %149 {strides = array<i32>} : memref<224x128xf32, #tpu.memory_space<vmem>>, vector<224x128xf32>,
    return
  }
  func.func @transform_0(%arg0: i32) -> (i32, i32) {
    %c0_i32 = arith.constant 0 : i32
    %c0_i32_0 = arith.constant 0 : i32
    return %arg0, %c0_i32 : i32, i32
  }
  func.func @transform_1(%arg0: i32) -> (i32, i32, i32) {
    %c0_i32 = arith.constant 0 : i32
    %c0_i32_0 = arith.constant 0 : i32
    %c0_i32_1 = arith.constant 0 : i32
    %c0_i32_2 = arith.constant 0 : i32
    return %c0_i32, %c0_i32_0, %c0_i32_1 : i32, i32, i32
  }
  func.func @transform_2(%arg0: i32) -> (i32, i32, i32) {
    %c0_i32 = arith.constant 0 : i32
    %c0_i32_0 = arith.constant 0 : i32
    %c0_i32_1 = arith.constant 0 : i32
    return %arg0, %c0_i32, %c0_i32_0 : i32, i32, i32
  }
  func.func @transform_3(%arg0: i32) -> (i32, i32, i32) {
    %c0_i32 = arith.constant 0 : i32
    %c0_i32_0 = arith.constant 0 : i32
    %c0_i32_1 = arith.constant 0 : i32
    return %arg0, %c0_i32, %c0_i32_0 : i32, i32, i32
  }
  func.func @transform_4(%arg0: i32) -> (i32, i32) {
    %c0_i32 = arith.constant 0 : i32
    %c0_i32_0 = arith.constant 0 : i32
    return %arg0, %c0_i32 : i32, i32
  }
}

</mosaic_0001>

<bundles_post_ra>
// kernel: fused_forward.1
= control target key start
LH: loop header
LB: loop body
LE: loop exit
PB: predicated region body
PF: predicated region fallthrough
CT: control target
= control target key end

     0   :  { %s3132_s15 = smov 0   ;;  %s4262_s0 = inlined_call_operand.vmem [shape: f32[1632,128], index: 0, kind: input, shape index: {}]   ;;  %s4263_s1 = inlined_call_operand.vmem [shape: f32[54,128,128], index: 1, kind: input, shape index: {}]   ;;  %s4264_s2 = inlined_call_operand.vmem [shape: f32[6,1,128], index: 2, kind: input, shape index: {}]   ;;  %s4265_s3 = inlined_call_operand.vmem [shape: f32[6,1,128], index: 3, kind: input, shape index: {}]   ;;  %s4266_s4 = inlined_call_operand.vmem [shape: f32[1344,128], index: 4, kind: output, shape index: {}]  }
   0x1 LB: > { %s3138_s16 = sadd.s32 4294967295, %s3104_s15   ;;  %p2882_p0 = scmp.ge.s32.totalorder %s3104_s15, 1  ;;  %s3104_s15 = sphi %s3132_s15, %s14_s15  }
   0x2   : > { %p179_p1 = scmp.lt.s32.totalorder %s3104_s15, 7 }
   0x4   : > { %p180_p2 = pnand %p2882_p0, %p179_p1 }
   0x6   : > { %183 = sbr.rel (%p180_p2) target bundleno = 830 (0x33e), region = 36 }
   0xb   : > { %s2885_s17 = smul.u32 1152, %s3138_s16  ;;  %p217_p4 = scmp.lt.s32.totalorder %s3138_s16, 5 }
   0xc   : > { %s211_s21 = smul.u32 34, %s3138_s16 }
   0xd   : > { %s3146_s20 = scalar_lea.vmem %s4263_s1, %s2885_s17  ;;  %s223_s7 = smul.u32 28, %s3138_s16 }
   0xe   : > { %v2902_v0 = vld [vmem:[%s3146_s20 + $0xf8] sm:$0xff]  ;;  %v2901_v1 = vld [vmem:[%s3146_s20 + $0xf0] sm:$0xff]  ;;  %v2900_v2 = vld [vmem:[%s3146_s20 + $0xe8] sm:$0xff]  ;;  %p212_p3 = scmp.lt.s32.totalorder %s211_s21, 203 }
   0xf   : > { %3038 = vmatpush.msra.mxu1 %v2902_v0  ;;  %3039 = vmatpush.msra.mxu2 %v2902_v0  ;;  %v2899_v3 = vld [vmem:[%s3146_s20 + $0xe0] sm:$0xff]  ;;  %v2898_v4 = vld [vmem:[%s3146_s20 + $0xd8] sm:$0xff]  ;;  %v2897_v5 = vld [vmem:[%s3146_s20 + $0xd0] sm:$0xff]  ;;  %s3791_s26 = scalar_select %p217_p4, %s3138_s16, 5 }
  0x10   : > { %3040 = vmatpush.msra.mxu3 %v2902_v0  ;;  %379 = vmatpush.msra.mxu0 %v2902_v0  ;;  %v2896_v6 = vld [vmem:[%s3146_s20 + $0xc8] sm:$0xff]  ;;  %v2895_v7 = vld [vmem:[%s3146_s20 + $0xc0] sm:$0xff]  ;;  %v2894_v8 = vld [vmem:[%s3146_s20 + $0xb8] sm:$0xff]  ;;  %s4283_s21 = smov (!%p212_p3, %s211_s21), 203  ;;  %p224_p5 = scmp.lt.s32.totalorder %s223_s7, 167 }
  0x11   : > { %3041 = vmatpush.msra.mxu1 %v2901_v1  ;;  %3042 = vmatpush.msra.mxu2 %v2901_v1  ;;  %v2893_v9 = vld [vmem:[%s3146_s20 + $0xb0] sm:$0xff]  ;;  %v2892_v10 = vld [vmem:[%s3146_s20 + $0xa8] sm:$0xff]  ;;  %s2883_s22 = sshll.u32 %s4283_s21, 3  ;;  %v2891_v11 = vld [vmem:[%s3146_s20 + $0xa0] sm:$0xff]  ;;  %s222_s29 = scalar_lea.vmem %s4265_s3, %s3791_s26 }
  0x12   : > { %3043 = vmatpush.msra.mxu3 %v2901_v1  ;;  %380 = vmatpush.msra.mxu0 %v2901_v1  ;;  %v2890_v12 = vld [vmem:[%s3146_s20 + $0x98] sm:$0xff]  ;;  %s3165_s25 = scalar_lea.vmem %s4262_s0, %s2883_s22  ;;  %v2889_v13 = vld [vmem:[%s3146_s20 + $0x90] sm:$0xff]  ;;  %v2888_v16 = vld [vmem:[%s3146_s20 + $0x88] sm:$0xff]  ;;  %s219_s6 = scalar_lea.vmem %s4264_s2, %s3791_s26 }
  0x13   : > { %3044 = vmatpush.msra.mxu1 %v2900_v2  ;;  %3045 = vmatpush.msra.mxu2 %v2900_v2  ;;  %v3169_v14 = vld [vmem:[%s3165_s25 + $0x39] sm:$0xff]  ;;  %v3172_v15 = vld [vmem:[%s3165_s25 + $0x71] sm:$0xff]  ;;  %v325_v17 = vld [vmem:[%s3165_s25 + $0xa9] sm:$0xff]  ;;  %s4285_s7 = smov (!%p224_p5, %s223_s7), 167 }
  0x14   : > { %3046 = vmatpush.msra.mxu3 %v2900_v2  ;;  %381 = vmatpush.msra.mxu0 %v2900_v2  ;;  %v2887_v18 = vld [vmem:[%s3146_s20 + $0x80] sm:$0xff]  ;;  %v339_v19 = vmax.f32 %v3169_v14, 0.0  ;;  %v346_v20 = vmax.f32 %v3172_v15, 0.0  ;;  %v2919_v21 = vld [vmem:[%s3146_s20 + $0x178] sm:$0xff]  ;;  %v353_v22 = vmax.f32 %v325_v17, 0.0  ;;  %v2918_v26 = vld [vmem:[%s3146_s20 + $0x170] sm:$0xff] }
  0x15   : > { %3047 = vmatpush.msra.mxu1 %v2899_v3  ;;  %3048 = vmatpush.msra.mxu2 %v2899_v3  ;;  %v303_v23 = vld [vmem:[%s3146_s20 + $0x78] sm:$0xff]  ;;  %v304_v24 = vld [vmem:[%s3165_s25 + $0x1] sm:$0xff]  ;;  %v302_v29 = vld [vmem:[%s3146_s20 + $0x70] sm:$0xff]  ;;  %s2884_s10 = sshll.u32 %s4285_s7, 3 }
  0x16   : > { %3049 = vmatpush.msra.mxu3 %v2899_v3  ;;  %382 = vmatpush.msra.mxu0 %v2899_v3  ;;  %v2936_v25 = vld [vmem:[%s3146_s20 + $0x1f8] sm:$0xff]  ;;  %v3189_v27 = vld [vmem:[%s3165_s25 + $0x41] sm:$0xff]  ;;  %v2935_v30 = vld [vmem:[%s3146_s20 + $0x1f0] sm:$0xff]  ;;  %v332_v32 = vmax.f32 %v304_v24, 0.0  ;;  %s4168_s13 = scalar_lea.vmem %s4266_s4, %s2884_s10 }
  0x17   : > { %3050 = vmatpush.msra.mxu1 %v2898_v4  ;;  %3051 = vmatpush.msra.mxu2 %v2898_v4  ;;  %v3192_v28 = vld [vmem:[%s3165_s25 + $0x79] sm:$0xff]  ;;  %v2917_v31 = vld [vmem:[%s3146_s20 + $0x168] sm:$0xff]  ;;  %v326_v33 = vld [vmem:[%s3165_s25 + $0xb1] sm:$0xff]  ;;  %v340_v35 = vmax.f32 %v3189_v27, 0.0 }
  0x18   : > { %3052 = vmatpush.msra.mxu3 %v2898_v4  ;;  %383 = vmatpush.msra.mxu0 %v2898_v4  ;;  %v301_v34 = vld [vmem:[%s3146_s20 + $0x68] sm:$0xff]  ;;  %v347_v36 = vmax.f32 %v3192_v28, 0.0  ;;  %v2953_v38 = vld [vmem:[%s3146_s20 + $0x278] sm:$0xff]  ;;  %v354_v39 = vmax.f32 %v326_v33, 0.0  ;;  %v2916_v40 = vld [vmem:[%s3146_s20 + $0x160] sm:$0xff] }
  0x19   : > { %3053 = vmatpush.msra.mxu1 %v2897_v5  ;;  %3054 = vmatpush.msra.mxu2 %v2897_v5  ;;  %v2934_v37 = vld [vmem:[%s3146_s20 + $0x1e8] sm:$0xff]  ;;  %v2933_v41 = vld [vmem:[%s3146_s20 + $0x1e0] sm:$0xff]  ;;  %v2952_v42 = vld [vmem:[%s3146_s20 + $0x270] sm:$0xff] }
  0x1a   : > { %3055 = vmatpush.msra.mxu3 %v2897_v5  ;;  %384 = vmatpush.msra.mxu0 %v2897_v5  ;;  %v305_v43 = vld [vmem:[%s3165_s25 + $0x9] sm:$0xff]  ;;  %v2915_v44 = vld [vmem:[%s3146_s20 + $0x158] sm:$0xff]  ;;  %v300_v45 = vld [vmem:[%s3146_s20 + $0x60] sm:$0xff] }
  0x1b   : > { %3056 = vmatpush.msra.mxu1 %v2896_v6  ;;  %3057 = vmatpush.msra.mxu2 %v2896_v6  ;;  %v3214_v46 = vld [vmem:[%s3165_s25 + $0x49] sm:$0xff]  ;;  %v3217_v47 = vld [vmem:[%s3165_s25 + $0x81] sm:$0xff]  ;;  %v2932_v48 = vld [vmem:[%s3146_s20 + $0x1d8] sm:$0xff]  ;;  %v333_v50 = vmax.f32 %v305_v43, 0.0 }
  0x1c   : > { %3058 = vmatpush.msra.mxu3 %v2896_v6  ;;  %385 = vmatpush.msra.mxu0 %v2896_v6  ;;  %v2951_v49 = vld [vmem:[%s3146_s20 + $0x268] sm:$0xff]  ;;  %v299_v51 = vld [vmem:[%s3146_s20 + $0x58] sm:$0xff]  ;;  %v2914_v52 = vld [vmem:[%s3146_s20 + $0x150] sm:$0xff]  ;;  %v341_v55 = vmax.f32 %v3214_v46, 0.0  ;;  %v348_v56 = vmax.f32 %v3217_v47, 0.0 }
  0x1d   : > { %3059 = vmatpush.msra.mxu1 %v2895_v7  ;;  %3060 = vmatpush.msra.mxu2 %v2895_v7  ;;  %v327_v53 = vld [vmem:[%s3165_s25 + $0xb9] sm:$0xff]  ;;  %v2931_v54 = vld [vmem:[%s3146_s20 + $0x1d0] sm:$0xff]  ;;  %v2913_v57 = vld [vmem:[%s3146_s20 + $0x148] sm:$0xff] }
  0x1e   : > { %3061 = vmatpush.msra.mxu3 %v2895_v7  ;;  %386 = vmatpush.msra.mxu0 %v2895_v7  ;;  %v2950_v58 = vld [vmem:[%s3146_s20 + $0x260] sm:$0xff]  ;;  %v355_v59 = vmax.f32 %v327_v53, 0.0  ;;  %v298_v60 = vld [vmem:[%s3146_s20 + $0x50] sm:$0xff]  ;;  %v2930_v61 = vld [vmem:[%s3146_s20 + $0x1c8] sm:$0xff] }
  0x1f   : > { %3062 = vmatpush.msra.mxu1 %v2894_v8  ;;  %3063 = vmatpush.msra.mxu2 %v2894_v8  ;;  %v2949_v62 = vld [vmem:[%s3146_s20 + $0x258] sm:$0xff]  ;;  %v297_v1 = vld [vmem:[%s3146_s20 + $0x48] sm:$0xff]  ;;  %v2912_v2 = vld [vmem:[%s3146_s20 + $0x140] sm:$0xff] }
  0x20   : > { %3064 = vmatpush.msra.mxu3 %v2894_v8  ;;  %387 = vmatpush.msra.mxu0 %v2894_v8  ;;  %v3233_v63 = vld [vmem:[%s3165_s25 + $0x11] sm:$0xff]  ;;  %v3245_v3 = vld [vmem:[%s3165_s25 + $0x89] sm:$0xff]  ;;  %v2929_v4 = vld [vmem:[%s3146_s20 + $0x1c0] sm:$0xff] }
  0x21   : > { %3065 = vmatpush.msra.mxu1 %v2893_v9  ;;  %3066 = vmatpush.msra.mxu2 %v2893_v9  ;;  %v3240_v0 = vld [vmem:[%s3165_s25 + $0x51] sm:$0xff]  ;;  %v334_v6 = vmax.f32 %v3233_v63, 0.0  ;;  %v296_v8 = vld [vmem:[%s3146_s20 + $0x40] sm:$0xff]  ;;  %v293_v33 = vld [vmem:[%s3146_s20 + $0x28] sm:$0xff] }
  0x22   : > { %3067 = vmatpush.msra.mxu3 %v2893_v9  ;;  %388 = vmatpush.msra.mxu0 %v2893_v9  ;;  %v2948_v5 = vld [vmem:[%s3146_s20 + $0x250] sm:$0xff]  ;;  %v2911_v7 = vld [vmem:[%s3146_s20 + $0x138] sm:$0xff]  ;;  %v328_v9 = vld [vmem:[%s3165_s25 + $0xc1] sm:$0xff] }
  0x23   : > { %3068 = vmatpush.msra.mxu1 %v2892_v10  ;;  %3069 = vmatpush.msra.mxu2 %v2892_v10  ;;  %v356_v17 = vmax.f32 %v328_v9, 0.0  ;;  %v3271_v24 = vld [vmem:[%s3165_s25 + $0x59] sm:$0xff]  ;;  %v2964_v14 = vld [vmem:[%s3146_s20 + $0x2c8] sm:$0xff] }
  0x24   : > { %3070 = vmatpush.msra.mxu3 %v2892_v10  ;;  %389 = vmatpush.msra.mxu0 %v2892_v10  ;;  %v2928_v10 = vld [vmem:[%s3146_s20 + $0x1b8] sm:$0xff]  ;;  %v288_v9 = vld [vmem:[%s3146_s20] sm:$0xff]  ;;  %v590_v27 = vld [vmem:[%s3165_s25 + $0x4a] sm:$0xff] }
  0x25   : > { %3071 = vmatpush.msra.mxu1 %v2891_v11  ;;  %3072 = vmatpush.msra.mxu2 %v2891_v11  ;;  %v3307_v53 = vld [vmem:[%s3165_s25 + $0x99] sm:$0xff] }
  0x26   : > { %3073 = vmatpush.msra.mxu3 %v2891_v11  ;;  %390 = vmatpush.msra.mxu0 %v2891_v11  ;;  %v342_v11 = vmax.f32 %v3240_v0, 0.0  ;;  %v584_v63 = vld [vmem:[%s3165_s25 + $0x1a] sm:$0xff]  ;;  %v591_v46 = vld [vmem:[%s3165_s25 + $0x52] sm:$0xff] }
  0x27   : > { %3074 = vmatpush.msra.mxu1 %v2890_v12  ;;  %3075 = vmatpush.msra.mxu2 %v2890_v12 }
  0x28   : > { %3076 = vmatpush.msra.mxu3 %v2890_v12  ;;  %391 = vmatpush.msra.mxu0 %v2890_v12  ;;  %v349_v12 = vmax.f32 %v3245_v3, 0.0 }
  0x29   : > { %3077 = vmatpush.msra.mxu1 %v2889_v13  ;;  %3078 = vmatpush.msra.mxu2 %v2889_v13 }
  0x2a   : > { %3079 = vmatpush.msra.mxu3 %v2889_v13  ;;  %392 = vmatpush.msra.mxu0 %v2889_v13  ;;  %v2947_v13 = vld [vmem:[%s3146_s20 + $0x248] sm:$0xff] }
  0x2b   : > { %3080 = vmatpush.msra.mxu1 %v2888_v16  ;;  %3081 = vmatpush.msra.mxu2 %v2888_v16 }
  0x2c   : > { %3082 = vmatpush.msra.mxu3 %v2888_v16  ;;  %393 = vmatpush.msra.mxu0 %v2888_v16  ;;  %v295_v16 = vld [vmem:[%s3146_s20 + $0x38] sm:$0xff] }
  0x2d   : > { %3083 = vmatpush.msra.mxu1 %v2887_v18  ;;  %3084 = vmatpush.msra.mxu2 %v2887_v18 }
  0x2e   : > { %416 = vmatmul.f32.vlgmr.msra.gmra.mxu1 %v339_v19  ;;  %437 = vmatmul.f32.vlgmr.msra.gmra.mxu2 %v346_v20 }
  0x2f   : > { %656 = vmatpush.msrb.mxu2 %v2919_v21  ;;  %3085 = vmatpush.msra.mxu3 %v2887_v18  ;;  %v2927_v21 = vld [vmem:[%s3146_s20 + $0x1b0] sm:$0xff] }
  0x30   : > { %458 = vmatmul.f32.vlgmr.msra.gmra.mxu3 %v353_v22  ;;  %480 = vmatpush.msrb.mxu1 %v303_v23  ;;  %v3263_v22 = vld [vmem:[%s3165_s25 + $0x19] sm:$0xff] }
  0x31   : > { %860 = vmatpush.msrb.mxu3 %v2936_v25  ;;  %657 = vmatpush.msrb.mxu2 %v2918_v26  ;;  %v2946_v23 = vld [vmem:[%s3146_s20 + $0x240] sm:$0xff]  ;;  %v2909_v25 = vld [vmem:[%s3146_s20 + $0x128] sm:$0xff]  ;;  %v294_v26 = vld [vmem:[%s3146_s20 + $0x30] sm:$0xff] }
  0x32   : > { %481 = vmatpush.msrb.mxu1 %v302_v29  ;;  %394 = vmatpush.msra.mxu0 %v2887_v18  ;;  %v2910_v18 = vld [vmem:[%s3146_s20 + $0x130] sm:$0xff] }
  0x33   : > { %861 = vmatpush.msrb.mxu3 %v2935_v30  ;;  %658 = vmatpush.msrb.mxu2 %v2917_v31  ;;  %v3276_v29 = vld [vmem:[%s3165_s25 + $0x91] sm:$0xff]  ;;  %v2926_v30 = vld [vmem:[%s3146_s20 + $0x1a8] sm:$0xff] }
  0x34   : > { %395 = vmatmul.f32.vlgmr.msra.gmra.mxu0 %v332_v32  ;;  %482 = vmatpush.msrb.mxu1 %v301_v34  ;;  %v2945_v31 = vld [vmem:[%s3146_s20 + $0x238] sm:$0xff]  ;;  %v335_v32 = vmax.f32 %v3263_v22, 0.0  ;;  %v2908_v34 = vld [vmem:[%s3146_s20 + $0x120] sm:$0xff] }
  0x35   : > { %862 = vmatpush.msrb.mxu3 %v2934_v37  ;;  %1064 = vmatpush.msrb.mxu0 %v2953_v38  ;;  %v329_v37 = vld [vmem:[%s3165_s25 + $0xc9] sm:$0xff]  ;;  %v2925_v38 = vld [vmem:[%s3146_s20 + $0x1a0] sm:$0xff]  ;;  %v2983_v22 = vld [vmem:[%s3146_s20 + $0x358] sm:$0xff] }
  0x36   : > { %419 = vmatmul.f32.gmra.mxu1 %v340_v35  ;;  %440 = vmatmul.f32.gmra.mxu2 %v347_v36  ;;  %v357_v43 = vmax.f32 %v329_v37, 0.0 }
  0x37   : > { %659 = vmatpush.msrb.mxu2 %v2916_v40  ;;  %863 = vmatpush.msrb.mxu3 %v2933_v41  ;;  %v350_v40 = vmax.f32 %v3276_v29, 0.0  ;;  %v2907_v41 = vld [vmem:[%s3146_s20 + $0x118] sm:$0xff] }
  0x38   : > { %461 = vmatmul.f32.gmra.mxu3 %v354_v39  ;;  %1065 = vmatpush.msrb.mxu0 %v2952_v42  ;;  %v343_v39 = vmax.f32 %v3271_v24, 0.0  ;;  %v2944_v42 = vld [vmem:[%s3146_s20 + $0x230] sm:$0xff] }
  0x39   : > { %660 = vmatpush.msrb.mxu2 %v2915_v44  ;;  %483 = vmatpush.msrb.mxu1 %v300_v45  ;;  %v292_v44 = vld [vmem:[%s3146_s20 + $0x20] sm:$0xff]  ;;  %v2924_v45 = vld [vmem:[%s3146_s20 + $0x198] sm:$0xff] }
  0x3a   : > { %864 = vmatpush.msrb.mxu3 %v2932_v48  ;;  %1066 = vmatpush.msrb.mxu0 %v2951_v49  ;;  %v3294_v48 = vld [vmem:[%s3165_s25 + $0x21] sm:$0xff] }
  0x3b   : > { %484 = vmatpush.msrb.mxu1 %v299_v51  ;;  %661 = vmatpush.msrb.mxu2 %v2914_v52  ;;  %v2943_v49 = vld [vmem:[%s3146_s20 + $0x228] sm:$0xff]  ;;  %v291_v51 = vld [vmem:[%s3146_s20 + $0x18] sm:$0xff]  ;;  %v2906_v52 = vld [vmem:[%s3146_s20 + $0x110] sm:$0xff] }
  0x3c   : > { %398 = vmatmul.f32.gmra.mxu0 %v333_v50  ;;  %865 = vmatpush.msrb.mxu3 %v2931_v54  ;;  %v3302_v50 = vld [vmem:[%s3165_s25 + $0x61] sm:$0xff]  ;;  %v2923_v54 = vld [vmem:[%s3146_s20 + $0x190] sm:$0xff] }
  0x3d   : > { %662 = vmatpush.msrb.mxu2 %v2913_v57  ;;  %1067 = vmatpush.msrb.mxu0 %v2950_v58  ;;  %v2942_v57 = vld [vmem:[%s3146_s20 + $0x220] sm:$0xff]  ;;  %v336_v58 = vmax.f32 %v3294_v48, 0.0  ;;  %v586_v48 = vld [vmem:[%s3165_s25 + $0x2a] sm:$0xff] }
  0x3e   : > { %422 = vmatmul.f32.gmra.mxu1 %v341_v55  ;;  %443 = vmatmul.f32.gmra.mxu2 %v348_v56 }
  0x3f   : > { %485 = vmatpush.msrb.mxu1 %v298_v60  ;;  %866 = vmatpush.msrb.mxu3 %v2930_v61  ;;  %v290_v60 = vld [vmem:[%s3146_s20 + $0x10] sm:$0xff] }
  0x40   : > { %464 = vmatmul.f32.gmra.mxu3 %v355_v59  ;;  %1068 = vmatpush.msrb.mxu0 %v2949_v62  ;;  %v2905_v59 = vld [vmem:[%s3146_s20 + $0x108] sm:$0xff]  ;;  %v330_v61 = vld [vmem:[%s3165_s25 + $0xd1] sm:$0xff] }
  0x41   : > { %486 = vmatpush.msrb.mxu1 %v297_v1  ;;  %663 = vmatpush.msrb.mxu2 %v2912_v2  ;;  %v2922_v62 = vld [vmem:[%s3146_s20 + $0x188] sm:$0xff]  ;;  %v344_v1 = vmax.f32 %v3302_v50, 0.0  ;;  %v351_v2 = vmax.f32 %v3307_v53, 0.0 }
  0x42   : > { %867 = vmatpush.msrb.mxu3 %v2929_v4  ;;  %1069 = vmatpush.msrb.mxu0 %v2948_v5  ;;  %v2941_v4 = vld [vmem:[%s3146_s20 + $0x218] sm:$0xff]  ;;  %v289_v5 = vld [vmem:[%s3146_s20 + $0x8] sm:$0xff] }
  0x43   : > { %664 = vmatpush.msrb.mxu2 %v2911_v7  ;;  %487 = vmatpush.msrb.mxu1 %v296_v8  ;;  %v358_v7 = vmax.f32 %v330_v61, 0.0  ;;  %v2904_v8 = vld [vmem:[%s3146_s20 + $0x100] sm:$0xff] }
  0x44   : > { %401 = vmatmul.f32.gmra.mxu0 %v334_v6  ;;  %868 = vmatpush.msrb.mxu3 %v2928_v10  ;;  %v3325_v10 = vld [vmem:[%s3165_s25 + $0x29] sm:$0xff] }
  0x45   : > { %1070 = vmatpush.msrb.mxu0 %v2947_v13  ;;  %488 = vmatpush.msrb.mxu1 %v295_v16  ;;  %v2940_v13 = vld [vmem:[%s3146_s20 + $0x210] sm:$0xff] }
  0x46   : > { %425 = vmatmul.f32.gmra.mxu1 %v342_v11  ;;  %446 = vmatmul.f32.gmra.mxu2 %v349_v12  ;;  %v3333_v16 = vld [vmem:[%s3165_s25 + $0x69] sm:$0xff] }
  0x47   : > { %665 = vmatpush.msrb.mxu2 %v2910_v18  ;;  %869 = vmatpush.msrb.mxu3 %v2927_v21  ;;  %v2987_v18 = vld [vmem:[%s3146_s20 + $0x378] sm:$0xff]  ;;  %v3338_v21 = vld [vmem:[%s3165_s25 + $0xa1] sm:$0xff]  ;;  %v345_v37 = vmax.f32 %v3333_v16, 0.0 }
  0x48   : > { %467 = vmatmul.f32.gmra.mxu3 %v356_v17  ;;  %1071 = vmatpush.msrb.mxu0 %v2946_v23  ;;  %v2921_v17 = vld [vmem:[%s3146_s20 + $0x180] sm:$0xff]  ;;  %v3004_v23 = vld [vmem:[%s3146_s20 + $0x3f8] sm:$0xff] }
  0x49   : > { %666 = vmatpush.msrb.mxu2 %v2909_v25  ;;  %489 = vmatpush.msrb.mxu1 %v294_v26  ;;  %v2939_v25 = vld [vmem:[%s3146_s20 + $0x208] sm:$0xff]  ;;  %v337_v26 = vmax.f32 %v3325_v10, 0.0  ;;  %v2999_v10 = vld [vmem:[%s3146_s20 + $0x3d0] sm:$0xff] }
  0x4a   : > { %870 = vmatpush.msrb.mxu3 %v2926_v30  ;;  %1072 = vmatpush.msrb.mxu0 %v2945_v31  ;;  %v2970_v30 = vld [vmem:[%s3146_s20 + $0x2f8] sm:$0xff]  ;;  %v2986_v31 = vld [vmem:[%s3146_s20 + $0x370] sm:$0xff] }
  0x4b   : > { %490 = vmatpush.msrb.mxu1 %v293_v33  ;;  %667 = vmatpush.msrb.mxu2 %v2908_v34  ;;  %v331_v33 = vld [vmem:[%s3165_s25 + $0xd9] sm:$0xff]  ;;  %v3003_v34 = vld [vmem:[%s3146_s20 + $0x3f0] sm:$0xff] }
  0x4c   : > { %404 = vmatmul.f32.gmra.mxu0 %v335_v32  ;;  %871 = vmatpush.msrb.mxu3 %v2925_v38  ;;  %v352_v38 = vmax.f32 %v3338_v21, 0.0 }
  0x4d   : > { %668 = vmatpush.msrb.mxu2 %v2907_v41  ;;  %1073 = vmatpush.msrb.mxu0 %v2944_v42  ;;  %v2938_v41 = vld [vmem:[%s3146_s20 + $0x200] sm:$0xff]  ;;  %v2969_v42 = vld [vmem:[%s3146_s20 + $0x2f0] sm:$0xff] }
  0x4e   : > { %428 = vmatmul.f32.gmra.mxu1 %v343_v39  ;;  %449 = vmatmul.f32.gmra.mxu2 %v350_v40 }
  0x4f   : > { %491 = vmatpush.msrb.mxu1 %v292_v44  ;;  %872 = vmatpush.msrb.mxu3 %v2924_v45  ;;  %v3021_v44 = vld [vmem:[%s3146_s20 + $0x478] sm:$0xff] }
  0x50   : > { %470 = vmatmul.f32.gmra.mxu3 %v357_v43  ;;  %1074 = vmatpush.msrb.mxu0 %v2943_v49  ;;  %v359_v43 = vmax.f32 %v331_v33, 0.0  ;;  %v3355_v45 = vld [vmem:[%s3165_s25 + $0x31] sm:$0xff]  ;;  %v2967_v33 = vld [vmem:[%s3146_s20 + $0x2e0] sm:$0xff] }
  0x51   : > { %492 = vmatpush.msrb.mxu1 %v291_v51  ;;  %669 = vmatpush.msrb.mxu2 %v2906_v52  ;;  %v3020_v49 = vld [vmem:[%s3146_s20 + $0x470] sm:$0xff]  ;;  %v229_v51 = vld [vmem:[%s3165_s25] sm:$0xff] }
  0x52   : > { %873 = vmatpush.msrb.mxu3 %v2923_v54  ;;  %1075 = vmatpush.msrb.mxu0 %v2942_v57  ;;  %v581_v52 = vld [vmem:[%s3165_s25 + $0x2] sm:$0xff]  ;;  %v338_v54 = vmax.f32 %v3355_v45, 0.0  ;;  %v257_v61 = vmax.f32 %v229_v51, 0.0  ;;  %v3000_v51 = vld [vmem:[%s3146_s20 + $0x3d8] sm:$0xff]  ;;  %v3016_v45 = vld [vmem:[%s3146_s20 + $0x450] sm:$0xff] }
  0x53   : > { %670 = vmatpush.msrb.mxu2 %v2905_v59  ;;  %493 = vmatpush.msrb.mxu1 %v290_v60  ;;  %v2985_v57 = vld [vmem:[%s3146_s20 + $0x368] sm:$0xff]  ;;  %v785_v60 = vld [vmem:[%s3165_s25 + $0x10] sm:$0xff] }
  0x54   : > { %407 = vmatmul.f32.gmra.mxu0 %v336_v58  ;;  %874 = vmatpush.msrb.mxu3 %v2922_v62  ;;  %v3002_v59 = vld [vmem:[%s3146_s20 + $0x3e8] sm:$0xff]  ;;  %v609_v62 = vmax.f32 %v581_v52, 0.0  ;;  %v2966_v52 = vld [vmem:[%s3146_s20 + $0x2d8] sm:$0xff] }
  0x55   : > { %1076 = vmatpush.msrb.mxu0 %v2941_v4  ;;  %494 = vmatpush.msrb.mxu1 %v289_v5  ;;  %v813_v4 = vmax.f32 %v785_v60, 0.0  ;;  %v2968_v5 = vld [vmem:[%s3146_s20 + $0x2e8] sm:$0xff] }
  0x56   : > { %431 = vmatmul.f32.gmra.mxu1 %v344_v1  ;;  %452 = vmatmul.f32.gmra.mxu2 %v351_v2 }
  0x57   : > { %671 = vmatpush.msrb.mxu2 %v2904_v8  ;;  %495 = vmatpush.msrb.mxu1 %v288_v9  ;;  %v582_v8 = vld [vmem:[%s3165_s25 + $0xa] sm:$0xff] }
  0x58   : > { %473 = vmatmul.f32.gmra.mxu3 %v358_v7  ;;  %1077 = vmatpush.msrb.mxu0 %v2940_v13  ;;  %v230_v7 = vld [vmem:[%s3165_s25 + $0x8] sm:$0xff]  ;;  %v786_v13 = vld [vmem:[%s3165_s25 + $0x18] sm:$0xff] }
  0x59   : > { %875 = vmatpush.msrb.mxu3 %v2921_v17  ;;  %1472 = vmatpush.msra.mxu2 %v2987_v18  ;;  %v3019_v9 = vld [vmem:[%s3146_s20 + $0x468] sm:$0xff]  ;;  %v258_v17 = vmax.f32 %v230_v7, 0.0  ;;  %v610_v18 = vmax.f32 %v582_v8, 0.0  ;;  %v2965_v7 = vld [vmem:[%s3146_s20 + $0x2d0] sm:$0xff]  ;;  %v791_v8 = vld [vmem:[%s3165_s25 + $0x40] sm:$0xff] }
  0x5a   : > { %1078 = vmatpush.msrb.mxu0 %v2939_v25  ;;  %1268 = vmatpush.msra.mxu1 %v2970_v30  ;;  %v583_v25 = vld [vmem:[%s3165_s25 + $0x12] sm:$0xff]  ;;  %v2984_v30 = vld [vmem:[%s3146_s20 + $0x360] sm:$0xff] }
  0x5b   : > { %1676 = vmatpush.msra.mxu3 %v3004_v23  ;;  %1473 = vmatpush.msra.mxu2 %v2986_v31  ;;  %v814_v23 = vmax.f32 %v786_v13, 0.0  ;;  %v3001_v31 = vld [vmem:[%s3146_s20 + $0x3e0] sm:$0xff]  ;;  %v819_v13 = vmax.f32 %v791_v8, 0.0 }
  0x5c   : > { %410 = vmatmul.f32.gmra.mxu0 %v337_v26  ;;  %1269 = vmatpush.msra.mxu1 %v2969_v42 }
  0x5d   : > { %1677 = vmatpush.msra.mxu3 %v3003_v34  ;;  %1079 = vmatpush.msrb.mxu0 %v2938_v41  ;;  %v787_v34 = vld [vmem:[%s3165_s25 + $0x20] sm:$0xff]  ;;  %v611_v41 = vmax.f32 %v583_v25, 0.0  ;;  %v2998_v25 = vld [vmem:[%s3146_s20 + $0x3c8] sm:$0xff] }
  0x5e   : > { %434 = vmatmul.f32.gmra.mxu1 %v345_v37  ;;  %455 = vmatmul.f32.gmra.mxu2 %v352_v38  ;;  %v815_v42 = vmax.f32 %v787_v34, 0.0  ;;  %v3015_v34 = vld [vmem:[%s3146_s20 + $0x448] sm:$0xff] }
  0x5f   : > { %1880 = vmatpush.msra.mxu0 %v3021_v44  ;;  %1474 = vmatpush.msra.mxu2 %v2985_v57  ;;  %v612_v44 = vmax.f32 %v584_v63, 0.0  ;;  %v789_v57 = vld [vmem:[%s3165_s25 + $0x30] sm:$0xff]  ;;  %v2997_v63 = vld [vmem:[%s3146_s20 + $0x3c0] sm:$0xff] }
  0x60   : > { %476 = vmatmul.f32.gmra.mxu3 %v359_v43  ;;  %1270 = vmatpush.msra.mxu1 %v2968_v5  ;;  %v788_v43 = vld [vmem:[%s3165_s25 + $0x28] sm:$0xff]  ;;  %v817_v60 = vmax.f32 %v789_v57, 0.0 }
  0x61   : > { %1881 = vmatpush.msra.mxu0 %v3020_v49  ;;  %1678 = vmatpush.msra.mxu3 %v3002_v59  ;;  %v816_v49 = vmax.f32 %v788_v43, 0.0 }
  0x62   : > { %1475 = vmatpush.msra.mxu2 %v2984_v30  ;;  %1271 = vmatpush.msra.mxu1 %v2967_v33 }
  0x63   : > { %1882 = vmatpush.msra.mxu0 %v3019_v9  ;;  %1679 = vmatpush.msra.mxu3 %v3001_v31  ;;  %v793_v31 = vld [vmem:[%s3165_s25 + $0x50] sm:$0xff] }
  0x64   : > { %413 = vmatmul.f32.gmra.mxu0 %v338_v54  ;;  %1476 = vmatpush.msra.mxu2 %v2983_v22 }
  0x65   : > { %1680 = vmatpush.msra.mxu3 %v3000_v51  ;;  %1272 = vmatpush.msra.mxu1 %v2966_v52  ;;  %v3014_v51 = vld [vmem:[%s3146_s20 + $0x440] sm:$0xff]  ;;  %v619_v52 = vmax.f32 %v591_v46, 0.0  ;;  %v2960_v46 = vld [vmem:[%s3146_s20 + $0x2a8] sm:$0xff] }
  0x66   : > { %496 = vmatmul.f32.vlgmr.msrb.gmra.mxu1 %v257_v61  ;;  %672 = vmatmul.f32.vlgmr.msrb.gmra.mxu2 %v609_v62  ;;  %v790_v61 = vld [vmem:[%s3165_s25 + $0x38] sm:$0xff]  ;;  %v614_v62 = vmax.f32 %v586_v48, 0.0 }
  0x67   : > { %v818_v5 = vmax.f32 %v790_v61, 0.0  ;;  %1681 = vmatpush.msra.mxu3 %v2999_v10  ;;  %1273 = vmatpush.msra.mxu1 %v2965_v7  ;;  %v2996_v48 = vld [vmem:[%s3146_s20 + $0x3b8] sm:$0xff] }
  0x68   : > { %876 = vmatmul.f32.vlgmr.msrb.gmra.mxu3 %v813_v4  ;;  %v3013_v7 = vld [vmem:[%s3146_s20 + $0x438] sm:$0xff] }
  0x69   : > { %1682 = vmatpush.msra.mxu3 %v2998_v25  ;;  %1274 = vmatpush.msra.mxu1 %v2964_v14  ;;  %v2961_v25 = vld [vmem:[%s3146_s20 + $0x2b0] sm:$0xff] }
  0x6b   : > { %1683 = vmatpush.msra.mxu3 %v2997_v63 }
  0x6c   : > { %1080 = vmatmul.f32.vlgmr.msrb.gmra.mxu0 %v334_v6  ;;  %v3018_v6 = vld [vmem:[%s3146_s20 + $0x460] sm:$0xff] }
  0x6d   : > { %1883 = vmatpush.msra.mxu0 %v3018_v6  ;;  %v618_v6 = vmax.f32 %v590_v27, 0.0  ;;  %1684 = vmatpush.msra.mxu3 %v2996_v48  ;;  %v3011_v48 = vld [vmem:[%s3146_s20 + $0x428] sm:$0xff] }
  0x6e   : > { %499 = vmatmul.f32.gmra.mxu1 %v258_v17  ;;  %675 = vmatmul.f32.gmra.mxu2 %v610_v18  ;;  %v792_v17 = vld [vmem:[%s3165_s25 + $0x48] sm:$0xff] }
  0x6f   : > { %v2981_v18 = vld [vmem:[%s3146_s20 + $0x348] sm:$0xff]  ;;  %v820_v30 = vmax.f32 %v792_v17, 0.0  ;;  %v2978_v17 = vld [vmem:[%s3146_s20 + $0x330] sm:$0xff] }
  0x70   : > { %879 = vmatmul.f32.gmra.mxu3 %v814_v23 }
  0x74   : > { %1083 = vmatmul.f32.gmra.mxu0 %v335_v32  ;;  %v585_v32 = vld [vmem:[%s3165_s25 + $0x22] sm:$0xff] }
  0x75   : > { %v613_v59 = vmax.f32 %v585_v32, 0.0  ;;  %v795_v32 = vld [vmem:[%s3165_s25 + $0x60] sm:$0xff] }
  0x76   : > { %502 = vmatmul.f32.gmra.mxu1 %v813_v4  ;;  %678 = vmatmul.f32.gmra.mxu2 %v611_v41  ;;  %v2982_v4 = vld [vmem:[%s3146_s20 + $0x350] sm:$0xff]  ;;  %v821_v41 = vmax.f32 %v793_v31, 0.0  ;;  %v823_v57 = vmax.f32 %v795_v32, 0.0  ;;  %v596_v32 = vld [vmem:[%s3165_s25 + $0x7a] sm:$0xff] }
  0x77   : > { %1477 = vmatpush.msra.mxu2 %v2982_v4  ;;  %v2962_v4 = vld [vmem:[%s3146_s20 + $0x2b8] sm:$0xff] }
  0x78   : > { %882 = vmatmul.f32.gmra.mxu3 %v815_v42 }
  0x79   : > { %1478 = vmatpush.msra.mxu2 %v2981_v18  ;;  %v2995_v18 = vld [vmem:[%s3146_s20 + $0x3b0] sm:$0xff] }
  0x7a   : > { %1685 = vmatpush.msra.mxu3 %v2995_v18 }
  0x7c   : > { %1086 = vmatmul.f32.gmra.mxu0 %v336_v58  ;;  %v3017_v58 = vld [vmem:[%s3146_s20 + $0x458] sm:$0xff] }
  0x7d   : > { %1884 = vmatpush.msra.mxu0 %v3017_v58 }
  0x7e   : > { %505 = vmatmul.f32.gmra.mxu1 %v814_v23  ;;  %681 = vmatmul.f32.gmra.mxu2 %v612_v44  ;;  %v2963_v44 = vld [vmem:[%s3146_s20 + $0x2c0] sm:$0xff] }
  0x7f   : > { %1885 = vmatpush.msra.mxu0 %v3016_v45  ;;  %1275 = vmatpush.msra.mxu1 %v2963_v44 }
  0x80   : > { %885 = vmatmul.f32.gmra.mxu3 %v816_v49 }
  0x81   : > { %1886 = vmatpush.msra.mxu0 %v3015_v34  ;;  %1276 = vmatpush.msra.mxu1 %v2962_v4  ;;  %v3012_v34 = vld [vmem:[%s3146_s20 + $0x430] sm:$0xff]  ;;  %v2976_v4 = vld [vmem:[%s3146_s20 + $0x320] sm:$0xff] }
  0x83   : > { %1887 = vmatpush.msra.mxu0 %v3014_v51  ;;  %1277 = vmatpush.msra.mxu1 %v2961_v25 }
  0x84   : > { %1089 = vmatmul.f32.gmra.mxu0 %v337_v26  ;;  %v587_v26 = vld [vmem:[%s3165_s25 + $0x32] sm:$0xff] }
  0x85   : > { %v615_v9 = vmax.f32 %v587_v26, 0.0  ;;  %v593_v26 = vld [vmem:[%s3165_s25 + $0x62] sm:$0xff]  ;;  %1888 = vmatpush.msra.mxu0 %v3013_v7  ;;  %1278 = vmatpush.msra.mxu1 %v2960_v46 }
  0x86   : > { %508 = vmatmul.f32.gmra.mxu1 %v815_v42  ;;  %684 = vmatmul.f32.gmra.mxu2 %v613_v59  ;;  %v794_v42 = vld [vmem:[%s3165_s25 + $0x58] sm:$0xff]  ;;  %v621_v45 = vmax.f32 %v593_v26, 0.0  ;;  %v801_v26 = vld [vmem:[%s3165_s25 + $0x90] sm:$0xff] }
  0x87   : > { %v2979_v59 = vld [vmem:[%s3146_s20 + $0x338] sm:$0xff]  ;;  %1889 = vmatpush.msra.mxu0 %v3012_v34  ;;  %v3010_v34 = vld [vmem:[%s3146_s20 + $0x420] sm:$0xff] }
  0x88   : > { %888 = vmatmul.f32.gmra.mxu3 %v817_v60 }
  0x89   : > { %1890 = vmatpush.msra.mxu0 %v3011_v48 }
  0x8b   : > { %1891 = vmatpush.msra.mxu0 %v3010_v34  ;;  %v601_v34 = vld [vmem:[%s3165_s25 + $0xa2] sm:$0xff] }
  0x8c   : > { %1092 = vmatmul.f32.gmra.mxu0 %v338_v54  ;;  %v588_v54 = vld [vmem:[%s3165_s25 + $0x3a] sm:$0xff] }
  0x8d   : > { %v616_v23 = vmax.f32 %v588_v54, 0.0 }
  0x8e   : > { %511 = vmatmul.f32.gmra.mxu1 %v816_v49  ;;  %687 = vmatmul.f32.gmra.mxu2 %v614_v62  ;;  %v822_v49 = vmax.f32 %v794_v42, 0.0  ;;  %v796_v62 = vld [vmem:[%s3165_s25 + $0x68] sm:$0xff]  ;;  %v799_v42 = vld [vmem:[%s3165_s25 + $0x80] sm:$0xff] }
  0x8f   : > { %v824_v10 = vmax.f32 %v796_v62, 0.0  ;;  %v597_v62 = vld [vmem:[%s3165_s25 + $0x82] sm:$0xff] }
  0x90   : > { %891 = vmatmul.f32.gmra.mxu3 %v818_v5  ;;  %v625_v7 = vmax.f32 %v597_v62, 0.0 }
  0x94   : > { %1095 = vmatmul.f32.gmra.mxu0 %v339_v19  ;;  %v589_v19 = vld [vmem:[%s3165_s25 + $0x42] sm:$0xff] }
  0x95   : > { %v617_v33 = vmax.f32 %v589_v19, 0.0  ;;  %v798_v19 = vld [vmem:[%s3165_s25 + $0x78] sm:$0xff] }
  0x96   : > { %514 = vmatmul.f32.gmra.mxu1 %v817_v60  ;;  %690 = vmatmul.f32.gmra.mxu2 %v615_v9  ;;  %v592_v60 = vld [vmem:[%s3165_s25 + $0x5a] sm:$0xff] }
  0x98   : > { %894 = vmatmul.f32.gmra.mxu3 %v819_v13 }
  0x9c   : > { %1098 = vmatmul.f32.gmra.mxu0 %v340_v35  ;;  %v2980_v35 = vld [vmem:[%s3146_s20 + $0x340] sm:$0xff] }
  0x9d   : > { %1479 = vmatpush.msra.mxu2 %v2980_v35 }
  0x9e   : > { %517 = vmatmul.f32.gmra.mxu1 %v818_v5  ;;  %693 = vmatmul.f32.gmra.mxu2 %v616_v23  ;;  %v620_v5 = vmax.f32 %v592_v60, 0.0  ;;  %v594_v23 = vld [vmem:[%s3165_s25 + $0x6a] sm:$0xff] }
  0x9f   : > { %1480 = vmatpush.msra.mxu2 %v2979_v59  ;;  %v622_v16 = vmax.f32 %v594_v23, 0.0  ;;  %v624_v59 = vmax.f32 %v596_v32, 0.0 }
  0xa0   : > { %897 = vmatmul.f32.gmra.mxu3 %v820_v30 }
  0xa1   : > { %1481 = vmatpush.msra.mxu2 %v2978_v17  ;;  %v598_v17 = vld [vmem:[%s3165_s25 + $0x8a] sm:$0xff] }
  0xa4   : > { %1101 = vmatmul.f32.gmra.mxu0 %v341_v55 }
  0xa6   : > { %520 = vmatmul.f32.gmra.mxu1 %v819_v13  ;;  %696 = vmatmul.f32.gmra.mxu2 %v617_v33  ;;  %v797_v13 = vld [vmem:[%s3165_s25 + $0x70] sm:$0xff]  ;;  %v826_v33 = vmax.f32 %v798_v19, 0.0  ;;  %v802_v19 = vld [vmem:[%s3165_s25 + $0x98] sm:$0xff] }
  0xa8   : > { %900 = vmatmul.f32.gmra.mxu3 %v821_v41 }
  0xab   : > { %v3425_v43 = vpop.f32.mrf.mxu1 }
  0xac   : > { %1104 = vmatmul.f32.gmra.mxu0 %v342_v11 }
  0xae   : > { %523 = vmatmul.f32.gmra.mxu1 %v820_v30  ;;  %699 = vmatmul.f32.gmra.mxu2 %v618_v6  ;;  %v2977_v6 = vld [vmem:[%s3146_s20 + $0x328] sm:$0xff] }
  0xaf   : > { %1482 = vmatpush.msra.mxu2 %v2977_v6  ;;  %v599_v6 = vld [vmem:[%s3165_s25 + $0x92] sm:$0xff] }
  0xb0   : > { %903 = vmatmul.f32.gmra.mxu3 %v822_v49 }
  0xb1   : > { %v3431_v55 = vpop.f32.mrf.mxu2  ;;  %v3433_v22 = vpop.f32.mrf.mxu0  ;;  %1483 = vmatpush.msra.mxu2 %v2976_v4 }
  0xb3   : > { %v3437_v0 = vpop.f32.mrf.mxu1  ;;  %v3439_v11 = vpop.f32.mrf.mxu3 }
  0xb4   : > { %1107 = vmatmul.f32.gmra.mxu0 %v343_v39 }
  0xb6   : > { %526 = vmatmul.f32.gmra.mxu1 %v821_v41  ;;  %702 = vmatmul.f32.gmra.mxu2 %v619_v52  ;;  %v595_v41 = vld [vmem:[%s3165_s25 + $0x72] sm:$0xff] }
  0xb7   : > { %v623_v63 = vmax.f32 %v595_v41, 0.0 }
  0xb8   : > { %906 = vmatmul.f32.gmra.mxu3 %v823_v57 }
  0xb9   : > { %v3446_v58 = vpop.f32.mrf.mxu2  ;;  %v3448_v61 = vpop.f32.mrf.mxu0 }
  0xbb   : > { %v3452_v24 = vpop.f32.mrf.mxu1  ;;  %v3454_v39 = vpop.f32.mrf.mxu3 }
  0xbc   : > { %1110 = vmatmul.f32.gmra.mxu0 %v344_v1  ;;  %v825_v1 = vmax.f32 %v797_v13, 0.0  ;;  %v2993_v13 = vld [vmem:[%s3146_s20 + $0x3a0] sm:$0xff] }
  0xbe   : > { %529 = vmatmul.f32.gmra.mxu1 %v822_v49  ;;  %705 = vmatmul.f32.gmra.mxu2 %v620_v5  ;;  %v2994_v49 = vld [vmem:[%s3146_s20 + $0x3a8] sm:$0xff] }
  0xbf   : > { %1686 = vmatpush.msra.mxu3 %v2994_v49  ;;  %v2992_v49 = vld [vmem:[%s3146_s20 + $0x398] sm:$0xff] }
  0xc0   : > { %909 = vmatmul.f32.gmra.mxu3 %v824_v10 }
  0xc1   : > { %v3460_v8 = vpop.f32.mrf.mxu2  ;;  %v3462_v9 = vpop.f32.mrf.mxu0  ;;  %1687 = vmatpush.msra.mxu3 %v2993_v13  ;;  %v3009_v13 = vld [vmem:[%s3146_s20 + $0x418] sm:$0xff] }
  0xc2   : > { %1892 = vmatpush.msra.mxu0 %v3009_v13 }
  0xc3   : > { %v3465_v54 = vpop.f32.mrf.mxu1  ;;  %v3467_v50 = vpop.f32.mrf.mxu3  ;;  %1688 = vmatpush.msra.mxu3 %v2992_v49 }
  0xc4   : > { %1113 = vmatmul.f32.gmra.mxu0 %v345_v37 }
  0xc6   : > { %532 = vmatmul.f32.gmra.mxu1 %v823_v57  ;;  %708 = vmatmul.f32.gmra.mxu2 %v621_v45  ;;  %v800_v57 = vld [vmem:[%s3165_s25 + $0x88] sm:$0xff]  ;;  %v829_v45 = vmax.f32 %v801_v26, 0.0  ;;  %v600_v26 = vld [vmem:[%s3165_s25 + $0x9a] sm:$0xff] }
  0xc7   : > { %v828_v60 = vmax.f32 %v800_v57, 0.0  ;;  %v803_v57 = vld [vmem:[%s3165_s25 + $0xa0] sm:$0xff]  ;;  %v628_v53 = vmax.f32 %v600_v26, 0.0  ;;  %v806_v26 = vld [vmem:[%s3165_s25 + $0xb8] sm:$0xff] }
  0xc8   : > { %912 = vmatmul.f32.gmra.mxu3 %v825_v1  ;;  %v831_v4 = vmax.f32 %v803_v57, 0.0  ;;  %v1009_v57 = vld [vmem:[%s3165_s25 + $0xb1] sm:$0xff] }
  0xc9   : > { %v3475_v30 = vpop.f32.mrf.mxu2  ;;  %v3477_v14 = vpop.f32.mrf.mxu0 }
  0xcb   : > { %v3480_v37 = vpop.f32.mrf.mxu1  ;;  %v3482_v31 = vpop.f32.mrf.mxu3 }
  0xcc   : > { %1116 = vmatmul.f32.gmra.mxu0 %v346_v20  ;;  %v827_v20 = vmax.f32 %v799_v42, 0.0  ;;  %v830_v42 = vmax.f32 %v802_v19, 0.0  ;;  %v1008_v19 = vld [vmem:[%s3165_s25 + $0xa9] sm:$0xff] }
  0xce   : > { %535 = vmatmul.f32.gmra.mxu1 %v824_v10  ;;  %711 = vmatmul.f32.gmra.mxu2 %v622_v16 }
  0xd0   : > { %915 = vmatmul.f32.gmra.mxu3 %v826_v33 }
  0xd1   : > { %v3488_v27 = vpop.f32.mrf.mxu2  ;;  %v3490_v35 = vpop.f32.mrf.mxu0 }
  0xd3   : > { %v3494_v44 = vpop.f32.mrf.mxu1  ;;  %v3496_v15 = vpop.f32.mrf.mxu3 }
  0xd4   : > { %1119 = vmatmul.f32.gmra.mxu0 %v347_v36 }
  0xd6   : > { %538 = vmatmul.f32.gmra.mxu1 %v825_v1  ;;  %714 = vmatmul.f32.gmra.mxu2 %v623_v63  ;;  %v2959_v1 = vld [vmem:[%s3146_s20 + $0x2a0] sm:$0xff]  ;;  %v2975_v63 = vld [vmem:[%s3146_s20 + $0x318] sm:$0xff] }
  0xd7   : > { %1279 = vmatpush.msra.mxu1 %v2959_v1  ;;  %1484 = vmatpush.msra.mxu2 %v2975_v63  ;;  %v805_v63 = vld [vmem:[%s3165_s25 + $0xb0] sm:$0xff] }
  0xd8   : > { %918 = vmatmul.f32.gmra.mxu3 %v827_v20 }
  0xd9   : > { %v3503_v51 = vpop.f32.mrf.mxu2  ;;  %v3505_v52 = vpop.f32.mrf.mxu0 }
  0xdb   : > { %v3508_v28 = vpop.f32.mrf.mxu1  ;;  %v3510_v36 = vpop.f32.mrf.mxu3 }
  0xdc   : > { %1122 = vmatmul.f32.gmra.mxu0 %v348_v56 }
  0xde   : > { %541 = vmatmul.f32.gmra.mxu1 %v826_v33  ;;  %717 = vmatmul.f32.gmra.mxu2 %v624_v59  ;;  %v626_v33 = vmax.f32 %v598_v17, 0.0  ;;  %v2958_v59 = vld [vmem:[%s3146_s20 + $0x298] sm:$0xff]  ;;  %v804_v17 = vld [vmem:[%s3165_s25 + $0xa8] sm:$0xff] }
  0xdf   : > { %1280 = vmatpush.msra.mxu1 %v2958_v59 }
  0xe0   : > { %921 = vmatmul.f32.gmra.mxu3 %v828_v60 }
  0xe1   : > { %v3517_v5 = vpop.f32.mrf.mxu2  ;;  %v3519_v10 = vpop.f32.mrf.mxu0 }
  0xe3   : > { %v3523_v47 = vpop.f32.mrf.mxu3  ;;  %v497_v56 = vpop.f32.mrf.mxu1 }
  0xe4   : > { %1125 = vmatmul.f32.gmra.mxu0 %v349_v12  ;;  %v498_v18 = vadd.f32 %v497_v56, %v3433_v22 }
  0xe6   : > { %544 = vmatmul.f32.gmra.mxu1 %v827_v20  ;;  %720 = vmatmul.f32.gmra.mxu2 %v625_v7 }
  0xe8   : > { %924 = vmatmul.f32.gmra.mxu3 %v829_v45 }
  0xe9   : > { %v673_v23 = vpop.f32.mrf.mxu2  ;;  %v1081_v25 = vpop.f32.mrf.mxu0 }
  0xea   : > { %v757_v16 = vadd.f32 %v673_v23, %v498_v18 }
  0xeb   : > { %v500_v41 = vpop.f32.mrf.mxu1  ;;  %v877_v3 = vpop.f32.mrf.mxu3 }
  0xec   : > { %v961_v12 = vadd.f32 %v877_v3, %v757_v16  ;;  %1128 = vmatmul.f32.gmra.mxu0 %v350_v40  ;;  %v501_v20 = vadd.f32 %v500_v41, %v3448_v61  ;;  %v627_v40 = vmax.f32 %v599_v6, 0.0  ;;  %v1036_v3 = vmax.f32 %v1008_v19, 0.0 }
  0xee   : > { %v3534_v22 = vadd.f32 %v1081_v25, %v961_v12  ;;  %547 = vmatmul.f32.gmra.mxu1 %v828_v60  ;;  %723 = vmatmul.f32.gmra.mxu2 %v626_v33  ;;  %v832_v25 = vmax.f32 %v804_v17, 0.0  ;;  %v2991_v33 = vld [vmem:[%s3146_s20 + $0x390] sm:$0xff] }
  0xef   : > { %1689 = vmatpush.msra.mxu3 %v2991_v33  ;;  %v2957_v12 = vld [vmem:[%s3146_s20 + $0x290] sm:$0xff] }
  0xf0   : > { %927 = vmatmul.f32.gmra.mxu3 %v830_v42  ;;  %1281 = vmatpush.msra.mxu1 %v2957_v12 }
  0xf1   : > { %v676_v46 = vpop.f32.mrf.mxu2  ;;  %v1084_v32 = vpop.f32.mrf.mxu0 }
  0xf2   : > { %v758_v29 = vadd.f32 %v676_v46, %v501_v20  ;;  %v629_v20 = vmax.f32 %v601_v34, 0.0 }
  0xf3   : > { %v503_v48 = vpop.f32.mrf.mxu1  ;;  %v880_v60 = vpop.f32.mrf.mxu3 }
  0xf4   : > { %v962_v62 = vadd.f32 %v880_v60, %v758_v29  ;;  %1131 = vmatmul.f32.gmra.mxu0 %v351_v2  ;;  %v504_v7 = vadd.f32 %v503_v48, %v3462_v9  ;;  %v2974_v9 = vld [vmem:[%s3146_s20 + $0x310] sm:$0xff]  ;;  %v1037_v48 = vmax.f32 %v1009_v57, 0.0  ;;  %v2972_v57 = vld [vmem:[%s3146_s20 + $0x300] sm:$0xff] }
  0xf5   : > { %1485 = vmatpush.msra.mxu2 %v2974_v9  ;;  %v3008_v29 = vld [vmem:[%s3146_s20 + $0x410] sm:$0xff] }
  0xf6   : > { %v3544_v61 = vadd.f32 %v1084_v32, %v962_v62  ;;  %550 = vmatmul.f32.gmra.mxu1 %v829_v45  ;;  %726 = vmatmul.f32.gmra.mxu2 %v627_v40  ;;  %v833_v32 = vmax.f32 %v805_v63, 0.0  ;;  %v602_v40 = vld [vmem:[%s3165_s25 + $0xaa] sm:$0xff] }
  0xf7   : > { %1893 = vmatpush.msra.mxu0 %v3008_v29  ;;  %v630_v13 = vmax.f32 %v602_v40, 0.0 }
  0xf8   : > { %930 = vmatmul.f32.gmra.mxu3 %v831_v4 }
  0xf9   : > { %v679_v56 = vpop.f32.mrf.mxu2  ;;  %v1087_v1 = vpop.f32.mrf.mxu0 }
  0xfa   : > { %v759_v18 = vadd.f32 %v679_v56, %v504_v7  ;;  %v2973_v56 = vld [vmem:[%s3146_s20 + $0x308] sm:$0xff] }
  0xfb   : > { %v506_v2 = vpop.f32.mrf.mxu1  ;;  %v883_v23 = vpop.f32.mrf.mxu3  ;;  %1486 = vmatpush.msra.mxu2 %v2973_v56  ;;  %v1012_v56 = vld [vmem:[%s3165_s25 + $0xc9] sm:$0xff] }
  0xfc   : > { %v963_v45 = vadd.f32 %v883_v23, %v759_v18  ;;  %1134 = vmatmul.f32.gmra.mxu0 %v352_v38  ;;  %v507_v41 = vadd.f32 %v506_v2, %v3477_v14  ;;  %v834_v18 = vmax.f32 %v806_v26, 0.0  ;;  %v2956_v23 = vld [vmem:[%s3146_s20 + $0x288] sm:$0xff] }
  0xfd   : > { %1282 = vmatpush.msra.mxu1 %v2956_v23  ;;  %1487 = vmatpush.msra.mxu2 %v2972_v57 }
  0xfe   : > { %v3554_v16 = vadd.f32 %v1087_v1, %v963_v45  ;;  %553 = vmatmul.f32.gmra.mxu1 %v830_v42  ;;  %729 = vmatmul.f32.gmra.mxu2 %v628_v53  ;;  %v2990_v53 = vld [vmem:[%s3146_s20 + $0x388] sm:$0xff]  ;;  %v603_v45 = vld [vmem:[%s3165_s25 + $0xb2] sm:$0xff] }
  0xff   : > { %1690 = vmatpush.msra.mxu3 %v2990_v53  ;;  %v631_v12 = vmax.f32 %v603_v45, 0.0  ;;  %v1040_v53 = vmax.f32 %v1012_v56, 0.0  ;;  %v809_v45 = vld [vmem:[%s3165_s25 + $0xd0] sm:$0xff] }
 0x100   : > { %933 = vmatmul.f32.gmra.mxu3 %v832_v25 }
 0x101   : > { %v682_v21 = vpop.f32.mrf.mxu2  ;;  %v1090_v38 = vpop.f32.mrf.mxu0 }
 0x102   : > { %v760_v6 = vadd.f32 %v682_v21, %v507_v41  ;;  %v807_v41 = vld [vmem:[%s3165_s25 + $0xc0] sm:$0xff] }
 0x103   : > { %v509_v49 = vpop.f32.mrf.mxu1  ;;  %v886_v42 = vpop.f32.mrf.mxu3  ;;  %v835_v63 = vmax.f32 %v807_v41, 0.0 }
 0x104   : > { %v964_v46 = vadd.f32 %v886_v42, %v760_v6  ;;  %1137 = vmatmul.f32.gmra.mxu0 %v1036_v3  ;;  %v510_v59 = vadd.f32 %v509_v49, %v3490_v35  ;;  %v1010_v35 = vld [vmem:[%s3165_s25 + $0xb9] sm:$0xff]  ;;  %v3007_v6 = vld [vmem:[%s3146_s20 + $0x408] sm:$0xff] }
 0x105   : > { %v1038_v19 = vmax.f32 %v1010_v35, 0.0  ;;  %1894 = vmatpush.msra.mxu0 %v3007_v6  ;;  %v604_v49 = vld [vmem:[%s3165_s25 + $0xba] sm:$0xff] }
 0x106   : > { %v3562_v14 = vadd.f32 %v1090_v38, %v964_v46  ;;  %556 = vmatmul.f32.gmra.mxu1 %v831_v4  ;;  %732 = vmatmul.f32.gmra.mxu2 %v629_v20  ;;  %v1011_v20 = vld [vmem:[%s3165_s25 + $0xc1] sm:$0xff] }
 0x107   : > { %v1039_v46 = vmax.f32 %v1011_v20, 0.0 }
 0x108   : > { %936 = vmatmul.f32.gmra.mxu3 %v833_v32 }
 0x109   : > { %v685_v60 = vpop.f32.mrf.mxu2  ;;  %v1093_v62 = vpop.f32.mrf.mxu0 }
 0x10a   : > { %v761_v7 = vadd.f32 %v685_v60, %v510_v59  ;;  %v808_v59 = vld [vmem:[%s3165_s25 + $0xc8] sm:$0xff]  ;;  %v632_v60 = vmax.f32 %v604_v49, 0.0  ;;  %v810_v49 = vld [vmem:[%s3165_s25 + $0xd8] sm:$0xff] }
 0x10b   : > { %v512_v1 = vpop.f32.mrf.mxu1  ;;  %v889_v4 = vpop.f32.mrf.mxu3 }
 0x10c   : > { %v965_v17 = vadd.f32 %v889_v4, %v761_v7  ;;  %1140 = vmatmul.f32.gmra.mxu0 %v1037_v48  ;;  %v513_v9 = vadd.f32 %v512_v1, %v3505_v52  ;;  %v605_v4 = vld [vmem:[%s3165_s25 + $0xc2] sm:$0xff] }
 0x10e   : > { %v3571_v2 = vadd.f32 %v1093_v62, %v965_v17  ;;  %559 = vmatmul.f32.gmra.mxu1 %v832_v25  ;;  %735 = vmatmul.f32.gmra.mxu2 %v630_v13  ;;  %v2989_v62 = vld [vmem:[%s3146_s20 + $0x380] sm:$0xff]  ;;  %v836_v13 = vmax.f32 %v808_v59, 0.0  ;;  %v838_v59 = vmax.f32 %v810_v49, 0.0 }
 0x10f   : > { %1691 = vmatpush.msra.mxu3 %v2989_v62 }
 0x110   : > { %939 = vmatmul.f32.gmra.mxu3 %v834_v18 }
 0x111   : > { %v688_v33 = vpop.f32.mrf.mxu2  ;;  %v1096_v34 = vpop.f32.mrf.mxu0 }
 0x112   : > { %v762_v3 = vadd.f32 %v688_v33, %v513_v9  ;;  %v3006_v33 = vld [vmem:[%s3146_s20 + $0x400] sm:$0xff] }
 0x113   : > { %v515_v21 = vpop.f32.mrf.mxu1  ;;  %v892_v38 = vpop.f32.mrf.mxu3  ;;  %1895 = vmatpush.msra.mxu0 %v3006_v33 }
 0x114   : > { %v966_v25 = vadd.f32 %v892_v38, %v762_v3  ;;  %1143 = vmatmul.f32.gmra.mxu0 %v1038_v19  ;;  %v516_v42 = vadd.f32 %v515_v21, %v3519_v10  ;;  %v2955_v10 = vld [vmem:[%s3146_s20 + $0x280] sm:$0xff]  ;;  %v633_v19 = vmax.f32 %v605_v4, 0.0 }
 0x115   : > { %1283 = vmatpush.msra.mxu1 %v2955_v10 }
 0x116   : > { %v3579_v52 = vadd.f32 %v1096_v34, %v966_v25  ;;  %562 = vmatmul.f32.gmra.mxu1 %v833_v32  ;;  %738 = vmatmul.f32.gmra.mxu2 %v631_v12  ;;  %v1013_v12 = vld [vmem:[%s3165_s25 + $0xd1] sm:$0xff] }
 0x117   : > { %v1041_v25 = vmax.f32 %v1013_v12, 0.0 }
 0x118   : > { %942 = vmatmul.f32.gmra.mxu3 %v835_v63 }
 0x119   : > { %v691_v29 = vpop.f32.mrf.mxu2  ;;  %v1099_v40 = vpop.f32.mrf.mxu0 }
 0x11a   : > { %v763_v48 = vadd.f32 %v691_v29, %v516_v42 }
 0x11b   : > { %v518_v26 = vpop.f32.mrf.mxu1  ;;  %v895_v7 = vpop.f32.mrf.mxu3 }
 0x11c   : > { %v967_v32 = vadd.f32 %v895_v7, %v763_v48  ;;  %1146 = vmatmul.f32.gmra.mxu0 %v1039_v46  ;;  %v519_v17 = vadd.f32 %v518_v26, %v3425_v43  ;;  %v606_v43 = vld [vmem:[%s3165_s25 + $0xca] sm:$0xff] }
 0x11d   : > { %v634_v46 = vmax.f32 %v606_v43, 0.0 }
 0x11e   : > { %v3588_v1 = vadd.f32 %v1099_v40, %v967_v32  ;;  %565 = vmatmul.f32.gmra.mxu1 %v834_v18  ;;  %741 = vmatmul.f32.gmra.mxu2 %v632_v60  ;;  %v837_v18 = vmax.f32 %v809_v45, 0.0  ;;  %v811_v32 = vld [vmem:[%s3165_s25 + $0xe0] sm:$0xff] }
 0x120   : > { %945 = vmatmul.f32.gmra.mxu3 %v836_v13 }
 0x121   : > { %v694_v35 = vpop.f32.mrf.mxu2  ;;  %v1102_v23 = vpop.f32.mrf.mxu0 }
 0x122   : > { %v764_v9 = vadd.f32 %v694_v35, %v519_v17  ;;  %v839_v35 = vmax.f32 %v811_v32, 0.0 }
 0x123   : > { %v521_v34 = vpop.f32.mrf.mxu1  ;;  %v898_v41 = vpop.f32.mrf.mxu3 }
 0x124   : > { %v968_v3 = vadd.f32 %v898_v41, %v764_v9  ;;  %1149 = vmatmul.f32.gmra.mxu0 %v1040_v53  ;;  %v522_v38 = vadd.f32 %v521_v34, %v3437_v0  ;;  %v607_v0 = vld [vmem:[%s3165_s25 + $0xd2] sm:$0xff]  ;;  %v812_v34 = vld [vmem:[%s3165_s25 + $0xe8] sm:$0xff] }
 0x125   : > { %v635_v56 = vmax.f32 %v607_v0, 0.0 }
 0x126   : > { %v3595_v21 = vadd.f32 %v1102_v23, %v968_v3  ;;  %568 = vmatmul.f32.gmra.mxu1 %v835_v63  ;;  %744 = vmatmul.f32.gmra.mxu2 %v633_v19  ;;  %v1014_v63 = vld [vmem:[%s3165_s25 + $0xd9] sm:$0xff] }
 0x127   : > { %v1042_v62 = vmax.f32 %v1014_v63, 0.0 }
 0x128   : > { %948 = vmatmul.f32.gmra.mxu3 %v837_v18 }
 0x129   : > { %v697_v6 = vpop.f32.mrf.mxu2  ;;  %v1105_v20 = vpop.f32.mrf.mxu0 }
 0x12a   : > { %v765_v42 = vadd.f32 %v697_v6, %v522_v38 }
 0x12b   : > { %v524_v57 = vpop.f32.mrf.mxu1  ;;  %v901_v29 = vpop.f32.mrf.mxu3 }
 0x12c   : > { %v969_v40 = vadd.f32 %v901_v29, %v765_v42  ;;  %1152 = vmatmul.f32.gmra.mxu0 %v1041_v25  ;;  %v525_v60 = vadd.f32 %v524_v57, %v3452_v24  ;;  %v608_v24 = vld [vmem:[%s3165_s25 + $0xda] sm:$0xff]  ;;  %v840_v25 = vmax.f32 %v812_v34, 0.0 }
 0x12d   : > { %v636_v3 = vmax.f32 %v608_v24, 0.0  ;;  %v1601_v29 = vld [vmem:[%s3165_s25 + $0x21] sm:$0xff] }
 0x12e   : > { %v3601_v48 = vadd.f32 %v1105_v20, %v969_v40  ;;  %571 = vmatmul.f32.gmra.mxu1 %v836_v13  ;;  %747 = vmatmul.f32.gmra.mxu2 %v634_v46  ;;  %v1015_v13 = vld [vmem:[%s3165_s25 + $0xe1] sm:$0xff] }
 0x12f   : > { %v1043_v9 = vmax.f32 %v1015_v13, 0.0  ;;  %v1397_v20 = vld [vmem:[%s3165_s25 + $0x20] sm:$0xff] }
 0x130   : > { %951 = vmatmul.f32.gmra.mxu3 %v838_v59  ;;  %v1425_v0 = vmax.f32 %v1397_v20, 0.0 }
 0x131   : > { %v700_v26 = vpop.f32.mrf.mxu2  ;;  %v1108_v7 = vpop.f32.mrf.mxu0 }
 0x132   : > { %v766_v10 = vadd.f32 %v700_v26, %v525_v60  ;;  %v1629_v26 = vmax.f32 %v1601_v29, 0.0  ;;  %v1807_v29 = vld [vmem:[%s3165_s25 + $0x32] sm:$0xff] }
 0x133   : > { %v527_v4 = vpop.f32.mrf.mxu1  ;;  %v904_v17 = vpop.f32.mrf.mxu3 }
 0x134   : > { %v970_v53 = vadd.f32 %v904_v17, %v766_v10  ;;  %1155 = vmatmul.f32.gmra.mxu0 %v1042_v62  ;;  %v528_v45 = vadd.f32 %v527_v4, %v3465_v54  ;;  %v1193_v54 = vld [vmem:[%s3165_s25 + $0x12] sm:$0xff]  ;;  %v1398_v10 = vld [vmem:[%s3165_s25 + $0x28] sm:$0xff] }
 0x135   : > { %v1221_v63 = vmax.f32 %v1193_v54, 0.0 }
 0x136   : > { %v3607_v23 = vadd.f32 %v1108_v7, %v970_v53  ;;  %574 = vmatmul.f32.gmra.mxu1 %v837_v18  ;;  %750 = vmatmul.f32.gmra.mxu2 %v635_v56  ;;  %v1016_v18 = vld [vmem:[%s3165_s25 + $0xe9] sm:$0xff] }
 0x137   : > { %v1044_v42 = vmax.f32 %v1016_v18, 0.0  ;;  %v1805_v7 = vld [vmem:[%s3165_s25 + $0x22] sm:$0xff]  ;;  %v1603_v18 = vld [vmem:[%s3165_s25 + $0x31] sm:$0xff] }
 0x138   : > { %954 = vmatmul.f32.gmra.mxu3 %v839_v35  ;;  %v1833_v4 = vmax.f32 %v1805_v7, 0.0  ;;  %v1602_v35 = vld [vmem:[%s3165_s25 + $0x29] sm:$0xff] }
 0x139   : > { %v703_v19 = vpop.f32.mrf.mxu2  ;;  %v1111_v33 = vpop.f32.mrf.mxu0  ;;  %v1630_v34 = vmax.f32 %v1602_v35, 0.0 }
 0x13a   : > { %v767_v41 = vadd.f32 %v703_v19, %v528_v45  ;;  %v1426_v45 = vmax.f32 %v1398_v10, 0.0 }
 0x13b   : > { %v530_v12 = vpop.f32.mrf.mxu1  ;;  %v907_v43 = vpop.f32.mrf.mxu3 }
 0x13c   : > { %v971_v38 = vadd.f32 %v907_v43, %v767_v41  ;;  %1158 = vmatmul.f32.gmra.mxu0 %v1043_v9  ;;  %v531_v49 = vadd.f32 %v530_v12, %v3480_v37  ;;  %v1194_v37 = vld [vmem:[%s3165_s25 + $0x1a] sm:$0xff]  ;;  %v1806_v41 = vld [vmem:[%s3165_s25 + $0x2a] sm:$0xff] }
 0x13d   : > { %v1222_v24 = vmax.f32 %v1194_v37, 0.0  ;;  %v1834_v43 = vmax.f32 %v1806_v41, 0.0 }
 0x13e   : > { %v3613_v6 = vadd.f32 %v1111_v33, %v971_v38  ;;  %577 = vmatmul.f32.gmra.mxu1 %v838_v59  ;;  %753 = vmatmul.f32.gmra.mxu2 %v636_v3 }
 0x140   : > { %957 = vmatmul.f32.gmra.mxu3 %v840_v25 }
 0x141   : > { %v706_v46 = vpop.f32.mrf.mxu2  ;;  %v1114_v57 = vpop.f32.mrf.mxu0 }
 0x142   : > { %v768_v40 = vadd.f32 %v706_v46, %v531_v49 }
 0x143   : > { %v533_v60 = vpop.f32.mrf.mxu1  ;;  %v910_v62 = vpop.f32.mrf.mxu3 }
 0x144   : > { %v972_v59 = vadd.f32 %v910_v62, %v768_v40  ;;  %1161 = vmatmul.f32.gmra.mxu0 %v1044_v42  ;;  %v534_v56 = vadd.f32 %v533_v60, %v3494_v44  ;;  %v1399_v44 = vld [vmem:[%s3165_s25 + $0x30] sm:$0xff] }
 0x145   : > { %v1427_v20 = vmax.f32 %v1399_v44, 0.0 }
 0x146   : > { %v3620_v32 = vadd.f32 %v1114_v57, %v972_v59  ;;  %1284 = vmatmul.f32.vlgmr.msra.gmra.mxu1 %v1221_v63  ;;  %1488 = vmatmul.f32.vlgmr.msra.gmra.mxu2 %v1425_v0  ;;  %v1631_v57 = vmax.f32 %v1603_v18, 0.0  ;;  %v1835_v0 = vmax.f32 %v1807_v29, 0.0  ;;  %v1604_v59 = vld [vmem:[%s3165_s25 + $0x39] sm:$0xff] }
 0x148   : > { %1692 = vmatmul.f32.vlgmr.msra.gmra.mxu3 %v1629_v26 }
 0x149   : > { %v709_v17 = vpop.f32.mrf.mxu2  ;;  %v1117_v53 = vpop.f32.mrf.mxu0 }
 0x14a   : > { %v769_v13 = vadd.f32 %v709_v17, %v534_v56  ;;  %v1632_v17 = vmax.f32 %v1604_v59, 0.0 }
 0x14b   : > { %v536_v9 = vpop.f32.mrf.mxu1  ;;  %v913_v19 = vpop.f32.mrf.mxu3 }
 0x14c   : > { %v973_v33 = vadd.f32 %v913_v19, %v769_v13  ;;  %1896 = vmatmul.f32.vlgmr.msra.gmra.mxu0 %v1833_v4  ;;  %v537_v12 = vadd.f32 %v536_v9, %v3508_v28  ;;  %v1400_v28 = vld [vmem:[%s3165_s25 + $0x38] sm:$0xff]  ;;  %v1605_v9 = vld [vmem:[%s3165_s25 + $0x41] sm:$0xff] }
 0x14d   : > { %v1428_v7 = vmax.f32 %v1400_v28, 0.0 }
 0x14e   : > { %v3627_v3 = vadd.f32 %v1117_v53, %v973_v33  ;;  %1287 = vmatmul.f32.gmra.mxu1 %v1222_v24  ;;  %1491 = vmatmul.f32.gmra.mxu2 %v1426_v45 }
 0x150   : > { %1695 = vmatmul.f32.gmra.mxu3 %v1630_v34 }
 0x151   : > { %v712_v38 = vpop.f32.mrf.mxu2  ;;  %v1120_v25 = vpop.f32.mrf.mxu0 }
 0x152   : > { %v770_v54 = vadd.f32 %v712_v38, %v537_v12  ;;  %v1633_v12 = vmax.f32 %v1605_v9, 0.0 }
 0x153   : > { %v539_v49 = vpop.f32.mrf.mxu1  ;;  %v916_v42 = vpop.f32.mrf.mxu3 }
 0x154   : > { %v974_v46 = vadd.f32 %v916_v42, %v770_v54  ;;  %1899 = vmatmul.f32.gmra.mxu0 %v1834_v43  ;;  %v540_v63 = vadd.f32 %v539_v49, %v3431_v55  ;;  %v1401_v55 = vld [vmem:[%s3165_s25 + $0x40] sm:$0xff]  ;;  %v1606_v49 = vld [vmem:[%s3165_s25 + $0x49] sm:$0xff] }
 0x155   : > { %v1429_v33 = vmax.f32 %v1401_v55, 0.0 }
 0x156   : > { %v3633_v40 = vadd.f32 %v1120_v25, %v974_v46  ;;  %1290 = vmatmul.f32.gmra.mxu1 %v1833_v4  ;;  %1494 = vmatmul.f32.gmra.mxu2 %v1427_v20  ;;  %v1808_v4 = vld [vmem:[%s3165_s25 + $0x3a] sm:$0xff] }
 0x157   : > { %v1836_v13 = vmax.f32 %v1808_v4, 0.0 }
 0x158   : > { %1698 = vmatmul.f32.gmra.mxu3 %v1631_v57 }
 0x159   : > { %v715_v60 = vpop.f32.mrf.mxu2  ;;  %v1123_v62 = vpop.f32.mrf.mxu0 }
 0x15a   : > { %v771_v26 = vadd.f32 %v715_v60, %v540_v63  ;;  %v1634_v63 = vmax.f32 %v1606_v49, 0.0 }
 0x15b   : > { %v542_v37 = vpop.f32.mrf.mxu1  ;;  %v919_v10 = vpop.f32.mrf.mxu3 }
 0x15c   : > { %v975_v56 = vadd.f32 %v919_v10, %v771_v26  ;;  %1902 = vmatmul.f32.gmra.mxu0 %v1835_v0  ;;  %v543_v35 = vadd.f32 %v542_v37, %v3446_v58  ;;  %v1402_v58 = vld [vmem:[%s3165_s25 + $0x48] sm:$0xff]  ;;  %v1607_v37 = vld [vmem:[%s3165_s25 + $0x51] sm:$0xff] }
 0x15d   : > { %v1430_v46 = vmax.f32 %v1402_v58, 0.0 }
 0x15e   : > { %v3639_v53 = vadd.f32 %v1123_v62, %v975_v56  ;;  %1293 = vmatmul.f32.gmra.mxu1 %v1834_v43  ;;  %1497 = vmatmul.f32.gmra.mxu2 %v1428_v7  ;;  %v1809_v43 = vld [vmem:[%s3165_s25 + $0x42] sm:$0xff] }
 0x15f   : > { %v1837_v18 = vmax.f32 %v1809_v43, 0.0 }
 0x160   : > { %1701 = vmatmul.f32.gmra.mxu3 %v1632_v17 }
 0x161   : > { %v718_v24 = vpop.f32.mrf.mxu2  ;;  %v1126_v45 = vpop.f32.mrf.mxu0 }
 0x162   : > { %v772_v19 = vadd.f32 %v718_v24, %v543_v35  ;;  %v1635_v35 = vmax.f32 %v1607_v37, 0.0 }
 0x163   : > { %v545_v34 = vpop.f32.mrf.mxu1  ;;  %v922_v41 = vpop.f32.mrf.mxu3 }
 0x164   : > { %v976_v44 = vadd.f32 %v922_v41, %v772_v19  ;;  %1905 = vmatmul.f32.gmra.mxu0 %v1836_v13  ;;  %v546_v25 = vadd.f32 %v545_v34, %v3460_v8  ;;  %v1403_v8 = vld [vmem:[%s3165_s25 + $0x50] sm:$0xff]  ;;  %v1608_v34 = vld [vmem:[%s3165_s25 + $0x59] sm:$0xff] }
 0x165   : > { %v1431_v56 = vmax.f32 %v1403_v8, 0.0 }
 0x166   : > { %v3645_v38 = vadd.f32 %v1126_v45, %v976_v44  ;;  %1296 = vmatmul.f32.gmra.mxu1 %v1835_v0  ;;  %1500 = vmatmul.f32.gmra.mxu2 %v1429_v33  ;;  %v1810_v0 = vld [vmem:[%s3165_s25 + $0x4a] sm:$0xff] }
 0x167   : > { %v1838_v59 = vmax.f32 %v1810_v0, 0.0 }
 0x168   : > { %1704 = vmatmul.f32.gmra.mxu3 %v1633_v12 }
 0x169   : > { %v721_v54 = vpop.f32.mrf.mxu2  ;;  %v1129_v20 = vpop.f32.mrf.mxu0 }
 0x16a   : > { %v773_v42 = vadd.f32 %v721_v54, %v546_v25  ;;  %v1636_v25 = vmax.f32 %v1608_v34, 0.0 }
 0x16b   : > { %v548_v57 = vpop.f32.mrf.mxu1  ;;  %v925_v29 = vpop.f32.mrf.mxu3 }
 0x16c   : > { %v977_v28 = vadd.f32 %v925_v29, %v773_v42  ;;  %1908 = vmatmul.f32.gmra.mxu0 %v1837_v18  ;;  %v549_v62 = vadd.f32 %v548_v57, %v3475_v30  ;;  %v1404_v30 = vld [vmem:[%s3165_s25 + $0x58] sm:$0xff]  ;;  %v1609_v57 = vld [vmem:[%s3165_s25 + $0x61] sm:$0xff] }
 0x16d   : > { %v1432_v44 = vmax.f32 %v1404_v30, 0.0 }
 0x16e   : > { %v3651_v60 = vadd.f32 %v1129_v20, %v977_v28  ;;  %1299 = vmatmul.f32.gmra.mxu1 %v1836_v13  ;;  %1503 = vmatmul.f32.gmra.mxu2 %v1430_v46  ;;  %v1811_v13 = vld [vmem:[%s3165_s25 + $0x52] sm:$0xff] }
 0x16f   : > { %v1839_v9 = vmax.f32 %v1811_v13, 0.0 }
 0x170   : > { %1707 = vmatmul.f32.gmra.mxu3 %v1634_v63 }
 0x171   : > { %v724_v26 = vpop.f32.mrf.mxu2  ;;  %v1132_v7 = vpop.f32.mrf.mxu0 }
 0x172   : > { %v774_v10 = vadd.f32 %v724_v26, %v549_v62  ;;  %v1637_v62 = vmax.f32 %v1609_v57, 0.0 }
 0x173   : > { %v551_v17 = vpop.f32.mrf.mxu1  ;;  %v928_v4 = vpop.f32.mrf.mxu3 }
 0x174   : > { %v978_v55 = vadd.f32 %v928_v4, %v774_v10  ;;  %1911 = vmatmul.f32.gmra.mxu0 %v1838_v59  ;;  %v552_v45 = vadd.f32 %v551_v17, %v3488_v27  ;;  %v1405_v27 = vld [vmem:[%s3165_s25 + $0x60] sm:$0xff]  ;;  %v1610_v17 = vld [vmem:[%s3165_s25 + $0x69] sm:$0xff] }
 0x175   : > { %v1433_v28 = vmax.f32 %v1405_v27, 0.0 }
 0x176   : > { %v3657_v24 = vadd.f32 %v1132_v7, %v978_v55  ;;  %1302 = vmatmul.f32.gmra.mxu1 %v1837_v18  ;;  %1506 = vmatmul.f32.gmra.mxu2 %v1431_v56  ;;  %v1812_v18 = vld [vmem:[%s3165_s25 + $0x5a] sm:$0xff] }
 0x177   : > { %v1840_v49 = vmax.f32 %v1812_v18, 0.0 }
 0x178   : > { %1710 = vmatmul.f32.gmra.mxu3 %v1635_v35 }
 0x179   : > { %v727_v19 = vpop.f32.mrf.mxu2  ;;  %v1135_v33 = vpop.f32.mrf.mxu0 }
 0x17a   : > { %v775_v41 = vadd.f32 %v727_v19, %v552_v45  ;;  %v1638_v45 = vmax.f32 %v1610_v17, 0.0 }
 0x17b   : > { %v554_v12 = vpop.f32.mrf.mxu1  ;;  %v931_v43 = vpop.f32.mrf.mxu3 }
 0x17c   : > { %v979_v58 = vadd.f32 %v931_v43, %v775_v41  ;;  %1914 = vmatmul.f32.gmra.mxu0 %v1839_v9  ;;  %v555_v20 = vadd.f32 %v554_v12, %v3503_v51  ;;  %v1406_v51 = vld [vmem:[%s3165_s25 + $0x68] sm:$0xff]  ;;  %v1611_v12 = vld [vmem:[%s3165_s25 + $0x71] sm:$0xff] }
 0x17d   : > { %v1434_v55 = vmax.f32 %v1406_v51, 0.0 }
 0x17e   : > { %v3663_v54 = vadd.f32 %v1135_v33, %v979_v58  ;;  %1305 = vmatmul.f32.gmra.mxu1 %v1838_v59  ;;  %1509 = vmatmul.f32.gmra.mxu2 %v1432_v44  ;;  %v1813_v59 = vld [vmem:[%s3165_s25 + $0x62] sm:$0xff] }
 0x17f   : > { %v1841_v37 = vmax.f32 %v1813_v59, 0.0 }
 0x180   : > { %1713 = vmatmul.f32.gmra.mxu3 %v1636_v25 }
 0x181   : > { %v730_v42 = vpop.f32.mrf.mxu2  ;;  %v1138_v46 = vpop.f32.mrf.mxu0 }
 0x182   : > { %v776_v29 = vadd.f32 %v730_v42, %v555_v20  ;;  %v1639_v20 = vmax.f32 %v1611_v12, 0.0 }
 0x183   : > { %v557_v63 = vpop.f32.mrf.mxu1  ;;  %v934_v0 = vpop.f32.mrf.mxu3 }
 0x184   : > { %v980_v8 = vadd.f32 %v934_v0, %v776_v29  ;;  %1917 = vmatmul.f32.gmra.mxu0 %v1840_v49  ;;  %v558_v7 = vadd.f32 %v557_v63, %v3517_v5  ;;  %v1407_v5 = vld [vmem:[%s3165_s25 + $0x70] sm:$0xff]  ;;  %v1612_v63 = vld [vmem:[%s3165_s25 + $0x79] sm:$0xff] }
 0x185   : > { %v1435_v58 = vmax.f32 %v1407_v5, 0.0 }
 0x186   : > { %v3669_v26 = vadd.f32 %v1138_v46, %v980_v8  ;;  %1308 = vmatmul.f32.gmra.mxu1 %v1839_v9  ;;  %1512 = vmatmul.f32.gmra.mxu2 %v1433_v28  ;;  %v1814_v9 = vld [vmem:[%s3165_s25 + $0x6a] sm:$0xff] }
 0x187   : > { %v1842_v34 = vmax.f32 %v1814_v9, 0.0 }
 0x188   : > { %1716 = vmatmul.f32.gmra.mxu3 %v1637_v62 }
 0x189   : > { %v733_v10 = vpop.f32.mrf.mxu2  ;;  %v1141_v56 = vpop.f32.mrf.mxu0 }
 0x18a   : > { %v777_v4 = vadd.f32 %v733_v10, %v558_v7  ;;  %v1640_v7 = vmax.f32 %v1612_v63, 0.0 }
 0x18b   : > { %v560_v35 = vpop.f32.mrf.mxu1  ;;  %v937_v13 = vpop.f32.mrf.mxu3 }
 0x18c   : > { %v981_v30 = vadd.f32 %v937_v13, %v777_v4  ;;  %1920 = vmatmul.f32.gmra.mxu0 %v1841_v37  ;;  %v561_v33 = vadd.f32 %v560_v35, %v3439_v11  ;;  %v1408_v11 = vld [vmem:[%s3165_s25 + $0x78] sm:$0xff]  ;;  %v1613_v35 = vld [vmem:[%s3165_s25 + $0x81] sm:$0xff] }
 0x18d   : > { %v1436_v8 = vmax.f32 %v1408_v11, 0.0 }
 0x18e   : > { %v3675_v19 = vadd.f32 %v1141_v56, %v981_v30  ;;  %1311 = vmatmul.f32.gmra.mxu1 %v1840_v49  ;;  %1515 = vmatmul.f32.gmra.mxu2 %v1434_v55  ;;  %v1815_v49 = vld [vmem:[%s3165_s25 + $0x72] sm:$0xff] }
 0x18f   : > { %v1843_v57 = vmax.f32 %v1815_v49, 0.0 }
 0x190   : > { %1719 = vmatmul.f32.gmra.mxu3 %v1638_v45 }
 0x191   : > { %v736_v41 = vpop.f32.mrf.mxu2  ;;  %v1144_v44 = vpop.f32.mrf.mxu0 }
 0x192   : > { %v778_v43 = vadd.f32 %v736_v41, %v561_v33  ;;  %v1641_v33 = vmax.f32 %v1613_v35, 0.0 }
 0x193   : > { %v563_v25 = vpop.f32.mrf.mxu1  ;;  %v940_v18 = vpop.f32.mrf.mxu3 }
 0x194   : > { %v982_v27 = vadd.f32 %v940_v18, %v778_v43  ;;  %1923 = vmatmul.f32.gmra.mxu0 %v1842_v34  ;;  %v564_v46 = vadd.f32 %v563_v25, %v3454_v39  ;;  %v1409_v39 = vld [vmem:[%s3165_s25 + $0x80] sm:$0xff]  ;;  %v1614_v25 = vld [vmem:[%s3165_s25 + $0x89] sm:$0xff] }
 0x195   : > { %v1437_v30 = vmax.f32 %v1409_v39, 0.0 }
 0x196   : > { %v3681_v42 = vadd.f32 %v1144_v44, %v982_v27  ;;  %1314 = vmatmul.f32.gmra.mxu1 %v1841_v37  ;;  %1518 = vmatmul.f32.gmra.mxu2 %v1435_v58  ;;  %v1816_v37 = vld [vmem:[%s3165_s25 + $0x7a] sm:$0xff] }
 0x197   : > { %v1844_v17 = vmax.f32 %v1816_v37, 0.0 }
 0x198   : > { %1722 = vmatmul.f32.gmra.mxu3 %v1639_v20 }
 0x199   : > { %v739_v29 = vpop.f32.mrf.mxu2  ;;  %v1147_v28 = vpop.f32.mrf.mxu0 }
 0x19a   : > { %v779_v0 = vadd.f32 %v739_v29, %v564_v46  ;;  %v1642_v46 = vmax.f32 %v1614_v25, 0.0 }
 0x19b   : > { %v566_v62 = vpop.f32.mrf.mxu1  ;;  %v943_v59 = vpop.f32.mrf.mxu3 }
 0x19c   : > { %v983_v51 = vadd.f32 %v943_v59, %v779_v0  ;;  %1926 = vmatmul.f32.gmra.mxu0 %v1843_v57  ;;  %v567_v56 = vadd.f32 %v566_v62, %v3467_v50  ;;  %v1410_v50 = vld [vmem:[%s3165_s25 + $0x88] sm:$0xff]  ;;  %v1615_v62 = vld [vmem:[%s3165_s25 + $0x91] sm:$0xff] }
 0x19d   : > { %v1438_v27 = vmax.f32 %v1410_v50, 0.0 }
 0x19e   : > { %v3687_v10 = vadd.f32 %v1147_v28, %v983_v51  ;;  %1317 = vmatmul.f32.gmra.mxu1 %v1842_v34  ;;  %1521 = vmatmul.f32.gmra.mxu2 %v1436_v8  ;;  %v1817_v34 = vld [vmem:[%s3165_s25 + $0x82] sm:$0xff] }
 0x19f   : > { %v1845_v12 = vmax.f32 %v1817_v34, 0.0 }
 0x1a0   : > { %1725 = vmatmul.f32.gmra.mxu3 %v1640_v7 }
 0x1a1   : > { %v742_v4 = vpop.f32.mrf.mxu2  ;;  %v1150_v55 = vpop.f32.mrf.mxu0 }
 0x1a2   : > { %v780_v13 = vadd.f32 %v742_v4, %v567_v56  ;;  %v1643_v56 = vmax.f32 %v1615_v62, 0.0 }
 0x1a3   : > { %v569_v45 = vpop.f32.mrf.mxu1  ;;  %v946_v9 = vpop.f32.mrf.mxu3 }
 0x1a4   : > { %v984_v5 = vadd.f32 %v946_v9, %v780_v13  ;;  %1929 = vmatmul.f32.gmra.mxu0 %v1844_v17  ;;  %v570_v44 = vadd.f32 %v569_v45, %v3482_v31  ;;  %v1411_v31 = vld [vmem:[%s3165_s25 + $0x90] sm:$0xff]  ;;  %v1616_v45 = vld [vmem:[%s3165_s25 + $0x99] sm:$0xff] }
 0x1a5   : > { %v1439_v51 = vmax.f32 %v1411_v31, 0.0 }
 0x1a6   : > { %v3693_v41 = vadd.f32 %v1150_v55, %v984_v5  ;;  %1320 = vmatmul.f32.gmra.mxu1 %v1843_v57  ;;  %1524 = vmatmul.f32.gmra.mxu2 %v1437_v30  ;;  %v1818_v57 = vld [vmem:[%s3165_s25 + $0x8a] sm:$0xff] }
 0x1a7   : > { %v1846_v63 = vmax.f32 %v1818_v57, 0.0 }
 0x1a8   : > { %1728 = vmatmul.f32.gmra.mxu3 %v1641_v33 }
 0x1a9   : > { %v745_v43 = vpop.f32.mrf.mxu2  ;;  %v1153_v58 = vpop.f32.mrf.mxu0 }
 0x1aa   : > { %v781_v18 = vadd.f32 %v745_v43, %v570_v44  ;;  %v1644_v44 = vmax.f32 %v1616_v45, 0.0 }
 0x1ab   : > { %v572_v20 = vpop.f32.mrf.mxu1  ;;  %v949_v49 = vpop.f32.mrf.mxu3 }
 0x1ac   : > { %v985_v11 = vadd.f32 %v949_v49, %v781_v18  ;;  %1932 = vmatmul.f32.gmra.mxu0 %v1845_v12  ;;  %v573_v28 = vadd.f32 %v572_v20, %v3496_v15  ;;  %v1412_v15 = vld [vmem:[%s3165_s25 + $0x98] sm:$0xff]  ;;  %v1617_v20 = vld [vmem:[%s3165_s25 + $0xa1] sm:$0xff] }
 0x1ad   : > { %v1440_v5 = vmax.f32 %v1412_v15, 0.0 }
 0x1ae   : > { %v3699_v29 = vadd.f32 %v1153_v58, %v985_v11  ;;  %1323 = vmatmul.f32.gmra.mxu1 %v1844_v17  ;;  %1527 = vmatmul.f32.gmra.mxu2 %v1438_v27  ;;  %v1819_v17 = vld [vmem:[%s3165_s25 + $0x92] sm:$0xff] }
 0x1af   : > { %v1847_v35 = vmax.f32 %v1819_v17, 0.0 }
 0x1b0   : > { %1731 = vmatmul.f32.gmra.mxu3 %v1642_v46 }
 0x1b1   : > { %v748_v0 = vpop.f32.mrf.mxu2  ;;  %v1156_v8 = vpop.f32.mrf.mxu0 }
 0x1b2   : > { %v782_v59 = vadd.f32 %v748_v0, %v573_v28  ;;  %v1645_v28 = vmax.f32 %v1617_v20, 0.0 }
 0x1b3   : > { %v575_v7 = vpop.f32.mrf.mxu1  ;;  %v952_v37 = vpop.f32.mrf.mxu3 }
 0x1b4   : > { %v986_v39 = vadd.f32 %v952_v37, %v782_v59  ;;  %1935 = vmatmul.f32.gmra.mxu0 %v1846_v63  ;;  %v576_v55 = vadd.f32 %v575_v7, %v3510_v36  ;;  %v1413_v36 = vld [vmem:[%s3165_s25 + $0xa0] sm:$0xff]  ;;  %v1618_v7 = vld [vmem:[%s3165_s25 + $0xa9] sm:$0xff] }
 0x1b5   : > { %v1441_v11 = vmax.f32 %v1413_v36, 0.0 }
 0x1b6   : > { %v3705_v4 = vadd.f32 %v1156_v8, %v986_v39  ;;  %1326 = vmatmul.f32.gmra.mxu1 %v1845_v12  ;;  %1530 = vmatmul.f32.gmra.mxu2 %v1439_v51  ;;  %v1820_v12 = vld [vmem:[%s3165_s25 + $0x9a] sm:$0xff] }
 0x1b7   : > { %v1848_v25 = vmax.f32 %v1820_v12, 0.0 }
 0x1b8   : > { %1734 = vmatmul.f32.gmra.mxu3 %v1643_v56 }
 0x1b9   : > { %v751_v13 = vpop.f32.mrf.mxu2  ;;  %v1159_v30 = vpop.f32.mrf.mxu0 }
 0x1ba   : > { %v783_v9 = vadd.f32 %v751_v13, %v576_v55  ;;  %v1646_v55 = vmax.f32 %v1618_v7, 0.0 }
 0x1bb   : > { %v578_v33 = vpop.f32.mrf.mxu1  ;;  %v955_v34 = vpop.f32.mrf.mxu3 }
 0x1bc   : > { %v987_v50 = vadd.f32 %v955_v34, %v783_v9  ;;  %1938 = vmatmul.f32.gmra.mxu0 %v1847_v35  ;;  %v579_v58 = vadd.f32 %v578_v33, %v3523_v47  ;;  %v1414_v47 = vld [vmem:[%s3165_s25 + $0xa8] sm:$0xff]  ;;  %v1619_v33 = vld [vmem:[%s3165_s25 + $0xb1] sm:$0xff] }
 0x1bd   : > { %v1442_v39 = vmax.f32 %v1414_v47, 0.0 }
 0x1be   : > { %v3711_v43 = vadd.f32 %v1159_v30, %v987_v50  ;;  %1329 = vmatmul.f32.gmra.mxu1 %v1846_v63  ;;  %1533 = vmatmul.f32.gmra.mxu2 %v1440_v5  ;;  %v1821_v63 = vld [vmem:[%s3165_s25 + $0xa2] sm:$0xff] }
 0x1bf   : > { %v1849_v62 = vmax.f32 %v1821_v63, 0.0 }
 0x1c0   : > { %1737 = vmatmul.f32.gmra.mxu3 %v1644_v44 }
 0x1c1   : > { %v754_v18 = vpop.f32.mrf.mxu2  ;;  %v1162_v27 = vpop.f32.mrf.mxu0 }
 0x1c2   : > { %v784_v49 = vadd.f32 %v754_v18, %v579_v58  ;;  %v1647_v58 = vmax.f32 %v1619_v33, 0.0 }
 0x1c3   : > { %v958_v46 = vpop.f32.mrf.mxu3  ;;  %v1285_v57 = vpop.f32.mrf.mxu1 }
 0x1c4   : > { %v988_v31 = vadd.f32 %v958_v46, %v784_v49  ;;  %1941 = vmatmul.f32.gmra.mxu0 %v1848_v25  ;;  %v1369_v8 = vadd.f32 %v1285_v57, %v3534_v22  ;;  %v1415_v22 = vld [vmem:[%s3165_s25 + $0xb0] sm:$0xff]  ;;  %v1620_v46 = vld [vmem:[%s3165_s25 + $0xb9] sm:$0xff] }
 0x1c5   : > { %v1443_v50 = vmax.f32 %v1415_v22, 0.0 }
 0x1c6   : > { %v3717_v0 = vadd.f32 %v1162_v27, %v988_v31  ;;  %1332 = vmatmul.f32.gmra.mxu1 %v1847_v35  ;;  %1536 = vmatmul.f32.gmra.mxu2 %v1441_v11  ;;  %v1822_v35 = vld [vmem:[%s3165_s25 + $0xaa] sm:$0xff] }
 0x1c7   : > { %v1850_v45 = vmax.f32 %v1822_v35, 0.0 }
 0x1c8   : > { %1740 = vmatmul.f32.gmra.mxu3 %v1645_v28 }
 0x1c9   : > { %v1489_v59 = vpop.f32.mrf.mxu2  ;;  %v1897_v51 = vpop.f32.mrf.mxu0 }
 0x1ca   : > { %v1573_v37 = vadd.f32 %v1489_v59, %v1369_v8  ;;  %v1648_v8 = vmax.f32 %v1620_v46, 0.0 }
 0x1cb   : > { %v1288_v56 = vpop.f32.mrf.mxu1  ;;  %v1693_v17 = vpop.f32.mrf.mxu3 }
 0x1cc   : > { %v1777_v15 = vadd.f32 %v1693_v17, %v1573_v37  ;;  %1944 = vmatmul.f32.gmra.mxu0 %v1849_v62  ;;  %v1370_v30 = vadd.f32 %v1288_v56, %v3544_v61  ;;  %v1416_v61 = vld [vmem:[%s3165_s25 + $0xb8] sm:$0xff]  ;;  %v1621_v56 = vld [vmem:[%s3165_s25 + $0xc1] sm:$0xff] }
 0x1cd   : > { %v1444_v31 = vmax.f32 %v1416_v61, 0.0 }
 0x1ce   : > { %v3723_v13 = vadd.f32 %v1897_v51, %v1777_v15  ;;  %1335 = vmatmul.f32.gmra.mxu1 %v1848_v25  ;;  %1539 = vmatmul.f32.gmra.mxu2 %v1442_v39  ;;  %v1823_v25 = vld [vmem:[%s3165_s25 + $0xb2] sm:$0xff] }
 0x1cf   : > { %v1851_v20 = vmax.f32 %v1823_v25, 0.0 }
 0x1d0   : > { %1743 = vmatmul.f32.gmra.mxu3 %v1646_v55 }
 0x1d1   : > { %v1492_v9 = vpop.f32.mrf.mxu2  ;;  %v1900_v5 = vpop.f32.mrf.mxu0 }
 0x1d2   : > { %v1574_v34 = vadd.f32 %v1492_v9, %v1370_v30  ;;  %v1825_v9 = vld [vmem:[%s3165_s25 + $0xc2] sm:$0xff] }
 0x1d3   : > { %v1291_v44 = vpop.f32.mrf.mxu1  ;;  %v1696_v12 = vpop.f32.mrf.mxu3  ;;  %v1853_v33 = vmax.f32 %v1825_v9, 0.0 }
 0x1d4   : > { %v1778_v36 = vadd.f32 %v1696_v12, %v1574_v34  ;;  %1947 = vmatmul.f32.gmra.mxu0 %v1850_v45  ;;  %v1371_v27 = vadd.f32 %v1291_v44, %v3554_v16  ;;  %v1417_v16 = vld [vmem:[%s3165_s25 + $0xc0] sm:$0xff]  ;;  %v1622_v44 = vld [vmem:[%s3165_s25 + $0xc9] sm:$0xff] }
 0x1d5   : > { %v1445_v15 = vmax.f32 %v1417_v16, 0.0 }
 0x1d6   : > { %v3729_v18 = vadd.f32 %v1900_v5, %v1778_v36  ;;  %1338 = vmatmul.f32.gmra.mxu1 %v1849_v62  ;;  %1542 = vmatmul.f32.gmra.mxu2 %v1443_v50  ;;  %v1824_v62 = vld [vmem:[%s3165_s25 + $0xba] sm:$0xff] }
 0x1d7   : > { %v1852_v7 = vmax.f32 %v1824_v62, 0.0 }
 0x1d8   : > { %1746 = vmatmul.f32.gmra.mxu3 %v1647_v58 }
 0x1d9   : > { %v1495_v49 = vpop.f32.mrf.mxu2  ;;  %v1903_v11 = vpop.f32.mrf.mxu0 }
 0x1da   : > { %v1575_v57 = vadd.f32 %v1495_v49, %v1371_v27  ;;  %v1650_v27 = vmax.f32 %v1622_v44, 0.0 }
 0x1db   : > { %v1294_v28 = vpop.f32.mrf.mxu1  ;;  %v1699_v63 = vpop.f32.mrf.mxu3 }
 0x1dc   : > { %v1779_v47 = vadd.f32 %v1699_v63, %v1575_v57  ;;  %1950 = vmatmul.f32.gmra.mxu0 %v1851_v20  ;;  %v1372_v51 = vadd.f32 %v1294_v28, %v3562_v14  ;;  %v1418_v14 = vld [vmem:[%s3165_s25 + $0xc8] sm:$0xff]  ;;  %v1623_v28 = vld [vmem:[%s3165_s25 + $0xd1] sm:$0xff] }
 0x1dd   : > { %v1446_v36 = vmax.f32 %v1418_v14, 0.0 }
 0x1de   : > { %v3735_v59 = vadd.f32 %v1903_v11, %v1779_v47  ;;  %1341 = vmatmul.f32.gmra.mxu1 %v1850_v45  ;;  %1545 = vmatmul.f32.gmra.mxu2 %v1444_v31  ;;  %v1649_v45 = vmax.f32 %v1621_v56, 0.0  ;;  %v1419_v11 = vld [vmem:[%s3165_s25 + $0xd0] sm:$0xff] }
 0x1df   : > { %v1447_v47 = vmax.f32 %v1419_v11, 0.0 }
 0x1e0   : > { %1749 = vmatmul.f32.gmra.mxu3 %v1648_v8 }
 0x1e1   : > { %v1498_v37 = vpop.f32.mrf.mxu2  ;;  %v1906_v39 = vpop.f32.mrf.mxu0 }
 0x1e2   : > { %v1576_v17 = vadd.f32 %v1498_v37, %v1372_v51  ;;  %v1651_v51 = vmax.f32 %v1623_v28, 0.0 }
 0x1e3   : > { %v1297_v55 = vpop.f32.mrf.mxu1  ;;  %v1702_v35 = vpop.f32.mrf.mxu3 }
 0x1e4   : > { %v1373_v22 = vadd.f32 %v1297_v55, %v3571_v2  ;;  %v1780_v30 = vadd.f32 %v1702_v35, %v1576_v17  ;;  %1953 = vmatmul.f32.gmra.mxu0 %v1852_v7  ;;  %v1624_v55 = vld [vmem:[%s3165_s25 + $0xd9] sm:$0xff] }
 0x1e5   : > { %v1652_v14 = vmax.f32 %v1624_v55, 0.0 }
 0x1e6   : > { %v3742_v5 = vadd.f32 %v1906_v39, %v1780_v30  ;;  %1344 = vmatmul.f32.gmra.mxu1 %v1851_v20  ;;  %1548 = vmatmul.f32.gmra.mxu2 %v1445_v15  ;;  %v1826_v20 = vld [vmem:[%s3165_s25 + $0xca] sm:$0xff]  ;;  %v1420_v39 = vld [vmem:[%s3165_s25 + $0xd8] sm:$0xff] }
 0x1e7   : > { %v1854_v46 = vmax.f32 %v1826_v20, 0.0 }
 0x1e8   : > { %1752 = vmatmul.f32.gmra.mxu3 %v1649_v45 }
 0x1e9   : > { %v1501_v34 = vpop.f32.mrf.mxu2  ;;  %v1909_v50 = vpop.f32.mrf.mxu0 }
 0x1ea   : > { %v1577_v12 = vadd.f32 %v1501_v34, %v1373_v22  ;;  %v1448_v22 = vmax.f32 %v1420_v39, 0.0 }
 0x1eb   : > { %v1300_v2 = vpop.f32.mrf.mxu1  ;;  %v1705_v58 = vpop.f32.mrf.mxu3 }
 0x1ec   : > { %v1374_v25 = vadd.f32 %v1300_v2, %v3579_v52  ;;  %v1781_v61 = vadd.f32 %v1705_v58, %v1577_v12  ;;  %1956 = vmatmul.f32.gmra.mxu0 %v1853_v33  ;;  %v1625_v2 = vld [vmem:[%s3165_s25 + $0xe1] sm:$0xff] }
 0x1ed   : > { %v1653_v11 = vmax.f32 %v1625_v2, 0.0 }
 0x1ee   : > { %v3748_v49 = vadd.f32 %v1909_v50, %v1781_v61  ;;  %1347 = vmatmul.f32.gmra.mxu1 %v1852_v7  ;;  %1551 = vmatmul.f32.gmra.mxu2 %v1446_v36  ;;  %v1827_v7 = vld [vmem:[%s3165_s25 + $0xd2] sm:$0xff]  ;;  %v1421_v50 = vld [vmem:[%s3165_s25 + $0xe0] sm:$0xff] }
 0x1ef   : > { %v1855_v56 = vmax.f32 %v1827_v7, 0.0 }
 0x1f0   : > { %1755 = vmatmul.f32.gmra.mxu3 %v1650_v27 }
 0x1f1   : > { %v1504_v57 = vpop.f32.mrf.mxu2  ;;  %v1912_v31 = vpop.f32.mrf.mxu0 }
 0x1f2   : > { %v1578_v63 = vadd.f32 %v1504_v57, %v1374_v25  ;;  %v1449_v25 = vmax.f32 %v1421_v50, 0.0 }
 0x1f3   : > { %v1303_v52 = vpop.f32.mrf.mxu1  ;;  %v1708_v8 = vpop.f32.mrf.mxu3 }
 0x1f4   : > { %v1375_v62 = vadd.f32 %v1303_v52, %v3588_v1  ;;  %v1782_v16 = vadd.f32 %v1708_v8, %v1578_v63  ;;  %1959 = vmatmul.f32.gmra.mxu0 %v1854_v46  ;;  %v1626_v52 = vld [vmem:[%s3165_s25 + $0xe9] sm:$0xff] }
 0x1f5   : > { %v1654_v39 = vmax.f32 %v1626_v52, 0.0 }
 0x1f6   : > { %v3754_v37 = vadd.f32 %v1912_v31, %v1782_v16  ;;  %1350 = vmatmul.f32.gmra.mxu1 %v1853_v33  ;;  %1554 = vmatmul.f32.gmra.mxu2 %v1447_v47  ;;  %v1828_v33 = vld [vmem:[%s3165_s25 + $0xda] sm:$0xff]  ;;  %v1422_v31 = vld [vmem:[%s3165_s25 + $0xe8] sm:$0xff] }
 0x1f7   : > { %v1856_v44 = vmax.f32 %v1828_v33, 0.0 }
 0x1f8   : > { %1758 = vmatmul.f32.gmra.mxu3 %v1651_v51 }
 0x1f9   : > { %v1507_v17 = vpop.f32.mrf.mxu2  ;;  %v1915_v15 = vpop.f32.mrf.mxu0 }
 0x1fa   : > { %v1579_v35 = vadd.f32 %v1507_v17, %v1375_v62  ;;  %v1450_v62 = vmax.f32 %v1422_v31, 0.0 }
 0x1fb   : > { %v1306_v1 = vpop.f32.mrf.mxu1  ;;  %v1711_v30 = vpop.f32.mrf.mxu3 }
 0x1fc   : > { %v1376_v45 = vadd.f32 %v1306_v1, %v3595_v21  ;;  %v1783_v9 = vadd.f32 %v1711_v30, %v1579_v35  ;;  %1962 = vmatmul.f32.gmra.mxu0 %v1855_v56  ;;  %v1627_v1 = vld [vmem:[%s3165_s25 + $0xf1] sm:$0xff] }
 0x1fd   : > { %v1655_v50 = vmax.f32 %v1627_v1, 0.0 }
 0x1fe   : > { %v3760_v34 = vadd.f32 %v1915_v15, %v1783_v9  ;;  %1353 = vmatmul.f32.gmra.mxu1 %v1854_v46  ;;  %1557 = vmatmul.f32.gmra.mxu2 %v1448_v22  ;;  %v1829_v46 = vld [vmem:[%s3165_s25 + $0xe2] sm:$0xff]  ;;  %v1423_v15 = vld [vmem:[%s3165_s25 + $0xf0] sm:$0xff] }
 0x1ff   : > { %v1857_v28 = vmax.f32 %v1829_v46, 0.0 }
 0x200   : > { %1761 = vmatmul.f32.gmra.mxu3 %v1652_v14 }
 0x201   : > { %v1510_v12 = vpop.f32.mrf.mxu2  ;;  %v1918_v36 = vpop.f32.mrf.mxu0 }
 0x202   : > { %v1580_v58 = vadd.f32 %v1510_v12, %v1376_v45  ;;  %v1451_v45 = vmax.f32 %v1423_v15, 0.0 }
 0x203   : > { %v1309_v21 = vpop.f32.mrf.mxu1  ;;  %v1714_v61 = vpop.f32.mrf.mxu3 }
 0x204   : > { %v1377_v27 = vadd.f32 %v1309_v21, %v3601_v48  ;;  %v1784_v20 = vadd.f32 %v1714_v61, %v1580_v58  ;;  %1965 = vmatmul.f32.gmra.mxu0 %v1856_v44  ;;  %v1628_v21 = vld [vmem:[%s3165_s25 + $0xf9] sm:$0xff] }
 0x205   : > { %v1656_v31 = vmax.f32 %v1628_v21, 0.0 }
 0x206   : > { %v3766_v57 = vadd.f32 %v1918_v36, %v1784_v20  ;;  %1356 = vmatmul.f32.gmra.mxu1 %v1855_v56  ;;  %1560 = vmatmul.f32.gmra.mxu2 %v1449_v25  ;;  %v1830_v56 = vld [vmem:[%s3165_s25 + $0xea] sm:$0xff]  ;;  %v1424_v36 = vld [vmem:[%s3165_s25 + $0xf8] sm:$0xff] }
 0x207   : > { %v1858_v55 = vmax.f32 %v1830_v56, 0.0 }
 0x208   : > { %1764 = vmatmul.f32.gmra.mxu3 %v1653_v11 }
 0x209   : > { %v1513_v63 = vpop.f32.mrf.mxu2  ;;  %v1921_v47 = vpop.f32.mrf.mxu0 }
 0x20a   : > { %v1581_v8 = vadd.f32 %v1513_v63, %v1377_v27  ;;  %v1452_v27 = vmax.f32 %v1424_v36, 0.0  ;;  %v1832_v63 = vld [vmem:[%s3165_s25 + $0xfa] sm:$0xff] }
 0x20b   : > { %v1312_v48 = vpop.f32.mrf.mxu1  ;;  %v1717_v16 = vpop.f32.mrf.mxu3 }
 0x20c   : > { %v1378_v51 = vadd.f32 %v1312_v48, %v3607_v23  ;;  %v1785_v7 = vadd.f32 %v1717_v16, %v1581_v8  ;;  %1968 = vmatmul.f32.gmra.mxu0 %v1857_v28 }
 0x20e   : > { %v3772_v17 = vadd.f32 %v1921_v47, %v1785_v7  ;;  %1359 = vmatmul.f32.gmra.mxu1 %v1856_v44  ;;  %1563 = vmatmul.f32.gmra.mxu2 %v1450_v62  ;;  %v1831_v44 = vld [vmem:[%s3165_s25 + $0xf2] sm:$0xff]  ;;  %v1860_v47 = vmax.f32 %v1832_v63, 0.0 }
 0x20f   : > { %v1859_v2 = vmax.f32 %v1831_v44, 0.0 }
 0x210   : > { %1767 = vmatmul.f32.gmra.mxu3 %v1654_v39 }
 0x211   : > { %v1516_v35 = vpop.f32.mrf.mxu2  ;;  %v1924_v22 = vpop.f32.mrf.mxu0 }
 0x212   : > { %v1582_v30 = vadd.f32 %v1516_v35, %v1378_v51 }
 0x213   : > { %v1315_v23 = vpop.f32.mrf.mxu1  ;;  %v1720_v9 = vpop.f32.mrf.mxu3 }
 0x214   : > { %v1379_v14 = vadd.f32 %v1315_v23, %v3613_v6  ;;  %v1786_v33 = vadd.f32 %v1720_v9, %v1582_v30  ;;  %1971 = vmatmul.f32.gmra.mxu0 %v1858_v55 }
 0x216   : > { %v3778_v12 = vadd.f32 %v1924_v22, %v1786_v33  ;;  %1362 = vmatmul.f32.gmra.mxu1 %v1857_v28  ;;  %1566 = vmatmul.f32.gmra.mxu2 %v1451_v45 }
 0x218   : > { %1770 = vmatmul.f32.gmra.mxu3 %v1655_v50 }
 0x219   : > { %v1519_v58 = vpop.f32.mrf.mxu2  ;;  %v1927_v25 = vpop.f32.mrf.mxu0 }
 0x21a   : > { %v1583_v61 = vadd.f32 %v1519_v58, %v1379_v14 }
 0x21b   : > { %v1318_v20 = vpop.f32.mrf.mxu1  ;;  %v1723_v11 = vpop.f32.mrf.mxu3 }
 0x21c   : > { %v1380_v6 = vadd.f32 %v1318_v20, %v3620_v32  ;;  %v1787_v46 = vadd.f32 %v1723_v11, %v1583_v61  ;;  %1974 = vmatmul.f32.gmra.mxu0 %v1859_v2 }
 0x21e   : > { %v3784_v28 = vadd.f32 %v1927_v25, %v1787_v46  ;;  %1365 = vmatmul.f32.gmra.mxu1 %v1858_v55  ;;  %1569 = vmatmul.f32.gmra.mxu2 %v1452_v27 }
 0x220   : > { %1773 = vmatmul.f32.gmra.mxu3 %v1656_v31 }
 0x221   : > { %v1522_v52 = vpop.f32.mrf.mxu2  ;;  %v1930_v8 = vpop.f32.mrf.mxu0 }
 0x222   : > { %v1584_v62 = vadd.f32 %v1522_v52, %v1380_v6  ;;  %v2009_v6 = vlaneseq }
 0x223   : > { %v1321_v48 = vpop.f32.mrf.mxu1  ;;  %v1726_v16 = vpop.f32.mrf.mxu3 }
 0x224   : > { %v1381_v51 = vadd.f32 %v1321_v48, %v3627_v3  ;;  %v1788_v32 = vadd.f32 %v1726_v16, %v1584_v62  ;;  %1977 = vmatmul.f32.gmra.mxu0 %v1860_v47  ;;  %v3807_v52 = vshrl.u32 %v2009_v6, 7 }
 0x226   : > { %v3788_v7 = vadd.f32 %v1930_v8, %v1788_v32 }
 0x229   : > { %v1525_v39 = vpop.f32.mrf.mxu2  ;;  %v1933_v56 = vpop.f32.mrf.mxu0 }
 0x22a   : > { %v1585_v15 = vadd.f32 %v1525_v39, %v1381_v51 }
 0x22b   : > { %v1324_v55 = vpop.f32.mrf.mxu1  ;;  %v1729_v35 = vpop.f32.mrf.mxu3 }
 0x22c   : > { %v1382_v22 = vadd.f32 %v1324_v55, %v3633_v40  ;;  %v1789_v3 = vadd.f32 %v1729_v35, %v1585_v15  ;;  %v2013_v15 = vadd.s32 24, %v3807_v52 }
 0x22e   : > { %v3798_v1 = vadd.f32 %v1933_v56, %v1789_v3  ;;  %v2015_v3 = vadd.s32 40, %v3807_v52 }
 0x231   : > { %v1528_v30 = vpop.f32.mrf.mxu2  ;;  %v1936_v45 = vpop.f32.mrf.mxu0 }
 0x232   : > { %v1586_v23 = vadd.f32 %v1528_v30, %v1382_v22  ;;  %v2063_v22 = vand.u32 15, %v2013_v15 }
 0x233   : > { %v1327_v9 = vpop.f32.mrf.mxu1  ;;  %v1732_v14 = vpop.f32.mrf.mxu3 }
 0x234   : > { %v1383_v33 = vadd.f32 %v1327_v9, %v3639_v53  ;;  %v1790_v50 = vadd.f32 %v1732_v14, %v1586_v23  ;;  %v4270_v23 = vmov 0.0   ;;  %vm2377_vm1 = vcmp.lt.s32.totalorder %v2063_v22, 14 }
 0x235   : > { %v2077_v14 = vand.u32 15, %v2015_v3 }
 0x236   : > { %v3801_v44 = vadd.f32 %v1936_v45, %v1790_v50 }
 0x237   : > { %vm2379_vm2 = vcmp.lt.s32.totalorder %v2077_v14, 14 }
 0x238   : > { %v3842_v6 = vsel %vm2379_vm2, 1.0, %v4270_v23 }
 0x239   : > { %v1531_v36 = vpop.f32.mrf.mxu2  ;;  %v1939_v2 = vpop.f32.mrf.mxu0 }
 0x23a   : > { %v1587_v58 = vadd.f32 %v1531_v36, %v1383_v33  ;;  %v2017_v33 = vadd.s32 56, %v3807_v52  ;;  %v3829_v36 = vsel %vm2377_vm1, 1.0, %v4270_v23 }
 0x23b   : > { %v1330_v25 = vpop.f32.mrf.mxu1  ;;  %v1735_v21 = vpop.f32.mrf.mxu3 }
 0x23c   : > { %v1384_v40 = vadd.f32 %v1330_v25, %v3645_v38  ;;  %v1791_v61 = vadd.f32 %v1735_v21, %v1587_v58  ;;  %v2011_v38 = vadd.s32 8, %v3807_v52  ;;  %v2091_v25 = vand.u32 15, %v2017_v33 }
 0x23d   : > { %v2019_v21 = vadd.s32 72, %v3807_v52 }
 0x23e   : > { %v3804_v27 = vadd.f32 %v1939_v2, %v1791_v61  ;;  %v2049_v56 = vand.u32 15, %v2011_v38  ;;  %vm2381_vm3 = vcmp.lt.s32.totalorder %v2091_v25, 14  ;;  %v2025_v25 = vadd.s32 120, %v3807_v52 }
 0x240   : > { %vm2375_vm0 = vcmp.lt.s32.totalorder %v2049_v56, 14 }
 0x241   : > { %v1534_v20 = vpop.f32.mrf.mxu2  ;;  %v1942_v11 = vpop.f32.mrf.mxu0  ;;  %v3823_v9 = vsel %vm2375_vm0, 1.0, %v4270_v23 }
 0x242   : > { %v1588_v46 = vadd.f32 %v1534_v20, %v1384_v40  ;;  %v2459_v50 = vmul.f32 %v3823_v9, %v3729_v18 }
 0x243   : > { %v1333_v31 = vpop.f32.mrf.mxu1  ;;  %v1738_v63 = vpop.f32.mrf.mxu3 }
 0x244   : > { %v1385_v53 = vadd.f32 %v1333_v31, %v3651_v60  ;;  %v1792_v47 = vadd.f32 %v1738_v63, %v1588_v46  ;;  %v2486_v20 = vadd.f32 %v2459_v50, %v3723_v13  ;;  %v2105_v31 = vand.u32 15, %v2019_v21 }
 0x245   : > { %v2021_v63 = vadd.s32 88, %v3807_v52 }
 0x246   : > { %v3809_v8 = vadd.f32 %v1942_v11, %v1792_v47  ;;  %v2461_v11 = vmul.f32 %v3829_v36, %v3742_v5  ;;  %v2487_v46 = vadd.f32 %v2486_v20, %v3735_v59  ;;  %v2463_v47 = vmul.f32 %v3842_v6, %v3754_v37 }
 0x247   : > { %vm2383_vm4 = vcmp.lt.s32.totalorder %v2105_v31, 14 }
 0x248   : > { %v3859_v33 = vsel %vm2383_vm4, 1.0, %v4270_v23 }
 0x249   : > { %v1537_v62 = vpop.f32.mrf.mxu2  ;;  %v1945_v48 = vpop.f32.mrf.mxu0  ;;  %4274 = vst [vmem:[#allocation3_spill] sm:$0xff] %v3859_v33  ;;  %v2467_v20 = vmul.f32 %v3859_v33, %v3778_v12 }
 0x24a   : > { %v1589_v16 = vadd.f32 %v1537_v62, %v1385_v53  ;;  %v2488_v53 = vadd.f32 %v2487_v46, %v2461_v11  ;;  %v3849_v62 = vsel %vm2381_vm3, 1.0, %v4270_v23 }
 0x24b   : > { %v1336_v51 = vpop.f32.mrf.mxu1  ;;  %v1741_v32 = vpop.f32.mrf.mxu3  ;;  %4273 = vst [vmem:[#allocation2_spill] sm:$0xff] %v3849_v62  ;;  %v2465_v3 = vmul.f32 %v3849_v62, %v3766_v57 }
 0x24c   : > { %v1793_v39 = vadd.f32 %v1741_v32, %v1589_v16  ;;  %v2489_v16 = vadd.f32 %v2488_v53, %v3748_v49  ;;  %v2119_v32 = vand.u32 15, %v2021_v63  ;;  %v2147_v53 = vand.u32 15, %v2025_v25 }
 0x24e   : > { %v3813_v55 = vadd.f32 %v1945_v48, %v1793_v39  ;;  %v2023_v39 = vadd.s32 104, %v3807_v52  ;;  %v2490_v22 = vadd.f32 %v2489_v16, %v2463_v47  ;;  %vm2385_vm5 = vcmp.lt.s32.totalorder %v2119_v32, 14 }
 0x24f   : > { %v3868_v63 = vsel %vm2385_vm5, 1.0, %v4270_v23  ;;  %v1386_v47 = vadd.f32 %v1336_v51, %v3657_v24  ;;  %v2027_v16 = vadd.s32 136, %v3807_v52  ;;  %vm2389_vm7 = vcmp.lt.s32.totalorder %v2147_v53, 14 }
 0x250   : > { %v2491_v14 = vadd.f32 %v2490_v22, %v3760_v34  ;;  %v2133_v50 = vand.u32 15, %v2023_v39  ;;  %4275 = vst [vmem:[#allocation4_spill] sm:$0xff] %v3868_v63  ;;  %v2029_v24 = vadd.s32 152, %v3807_v52 }
 0x251   : > { %v1540_v35 = vpop.f32.mrf.mxu2  ;;  %v3815_v60 = vpop.f32.mrf.mxu0  ;;  %v2161_v62 = vand.u32 15, %v2027_v16 }
 0x252   : > { %v2492_v21 = vadd.f32 %v2491_v14, %v2465_v3  ;;  %vm2387_vm6 = vcmp.lt.s32.totalorder %v2133_v50, 14  ;;  %v2469_v3 = vmul.f32 %v3868_v63, %v3788_v7  ;;  %v1590_v14 = vadd.f32 %v1540_v35, %v1386_v47 }
 0x253   : > { %v3818_v30 = vpop.f32.mrf.mxu1  ;;  %v3820_v45 = vpop.f32.mrf.mxu3  ;;  %v3875_v33 = vsel %vm2387_vm6, 1.0, %v4270_v23  ;;  %v3884_v35 = vsel %vm2389_vm7, 1.0, %v4270_v23  ;;  %vm2391_vm8 = vcmp.lt.s32.totalorder %v2161_v62, 14 }
 0x254   : > { %v2493_v31 = vadd.f32 %v2492_v21, %v3772_v17  ;;  %4276 = vst [vmem:[#allocation5_spill] sm:$0xff] %v3875_v33  ;;  %v2471_v25 = vmul.f32 %v3875_v33, %v3801_v44  ;;  %v1387_v47 = vadd.f32 %v3818_v30, %v3663_v54  ;;  %v2473_v23 = vmul.f32 %v3884_v35, %v3809_v8 }
 0x255   : > { %v4277_v54 = vmov 0.0  }
 0x256   : > { %v2494_v22 = vadd.f32 %v2493_v31, %v2467_v20  ;;  %v1794_v20 = vadd.f32 %v3820_v45, %v1590_v14  ;;  %v2031_v45 = vadd.s32 168, %v3807_v52  ;;  %v3898_v30 = vsel %vm2391_vm8, 1.0, %v4277_v54 }
 0x258   : > { %v2495_v21 = vadd.f32 %v2494_v22, %v3784_v28  ;;  %v3895_v33 = vadd.f32 %v3815_v60, %v1794_v20 }
 0x259   : > { %v3831_v2 = vpop.f32.mrf.mxu2  ;;  %v3833_v58 = vpop.f32.mrf.mxu0 }
 0x25a   : > { %v2496_v51 = vadd.f32 %v2495_v21, %v2469_v3  ;;  %v1591_v22 = vadd.f32 %v3831_v2, %v1387_v47  ;;  %v2175_v3 = vand.u32 15, %v2029_v24  ;;  %v2189_v24 = vand.u32 15, %v2031_v45 }
 0x25b   : > { %v1342_v40 = vpop.f32.mrf.mxu1  ;;  %v3836_v61 = vpop.f32.mrf.mxu3 }
 0x25c   : > { %v1388_v50 = vadd.f32 %v1342_v40, %v3669_v26  ;;  %v2497_v16 = vadd.f32 %v2496_v51, %v3798_v1  ;;  %vm2393_vm9 = vcmp.lt.s32.totalorder %v2175_v3, 14  ;;  %vm2395_vm10 = vcmp.lt.s32.totalorder %v2189_v24, 14 }
 0x25d   : > { %v3922_v3 = vsel %vm2395_vm10, 1.0, %v4277_v54 }
 0x25e   : > { %v2498_v14 = vadd.f32 %v2497_v16, %v2471_v25  ;;  %v2475_v25 = vmul.f32 %v3898_v30, %v3895_v33 }
 0x260   : > { %v2499_v2 = vadd.f32 %v2498_v14, %v3804_v27 }
 0x261   : > { %v1546_v48 = vpop.f32.mrf.mxu2  ;;  %v3851_v38 = vpop.f32.mrf.mxu0 }
 0x262   : > { %v1592_v53 = vadd.f32 %v1546_v48, %v1388_v50  ;;  %v2500_v51 = vadd.f32 %v2499_v2, %v2473_v23 }
 0x263   : > { %v1345_v56 = vpop.f32.mrf.mxu1  ;;  %v1750_v15 = vpop.f32.mrf.mxu3 }
 0x264   : > { %v1389_v62 = vadd.f32 %v1345_v56, %v3675_v19  ;;  %v1796_v48 = vadd.f32 %v1750_v15, %v1592_v53  ;;  %v2033_v15 = vadd.s32 184, %v3807_v52 }
 0x266   : > { %v3906_v47 = vadd.f32 %v3851_v38, %v1796_v48 }
 0x269   : > { %v1549_v11 = vpop.f32.mrf.mxu2  ;;  %v3864_v46 = vpop.f32.mrf.mxu0 }
 0x26b   : > { %v1348_v32 = vpop.f32.mrf.mxu1  ;;  %v1753_v39 = vpop.f32.mrf.mxu3 }
 0x26c   : > { %v1390_v21 = vadd.f32 %v1348_v32, %v3681_v42  ;;  %v1795_v42 = vadd.f32 %v3836_v61, %v1591_v22  ;;  %v1593_v32 = vadd.f32 %v1549_v11, %v1389_v62  ;;  %v3912_v61 = vsel %vm2393_vm9, 1.0, %v4277_v54 }
 0x26e   : > { %v3915_v53 = vadd.f32 %v3833_v58, %v1795_v42  ;;  %v1797_v16 = vadd.f32 %v1753_v39, %v1593_v32 }
 0x270   : > { %v3926_v45 = vadd.f32 %v3864_v46, %v1797_v16  ;;  %v2035_v16 = vadd.s32 200, %v3807_v52 }
 0x271   : > { %v1552_v31 = vpop.f32.mrf.mxu2  ;;  %v1960_v63 = vpop.f32.mrf.mxu0 }
 0x272   : > { %v1594_v50 = vadd.f32 %v1552_v31, %v1390_v21  ;;  %v2501_v31 = vadd.f32 %v2500_v51, %v3813_v55 }
 0x273   : > { %v1351_v26 = vpop.f32.mrf.mxu1  ;;  %v1756_v40 = vpop.f32.mrf.mxu3 }
 0x274   : > { %v1391_v19 = vadd.f32 %v1351_v26, %v3687_v10  ;;  %v1798_v56 = vadd.f32 %v1756_v40, %v1594_v50  ;;  %v2502_v38 = vadd.f32 %v2501_v31, %v2475_v25  ;;  %v2477_v10 = vmul.f32 %v3912_v61, %v3906_v47 }
 0x275   : > { %v2203_v40 = vand.u32 15, %v2033_v15 }
 0x276   : > { %v3919_v26 = vadd.f32 %v1960_v63, %v1798_v56  ;;  %v2503_v21 = vadd.f32 %v2502_v38, %v3915_v53 }
 0x277   : > { %vm2397_vm11 = vcmp.lt.s32.totalorder %v2203_v40, 14  ;;  %v2217_v40 = vand.u32 15, %v2035_v16 }
 0x278   : > { %v2504_v48 = vadd.f32 %v2503_v21, %v2477_v10  ;;  %v2479_v50 = vmul.f32 %v3922_v3, %v3919_v26  ;;  %v3933_v46 = vsel %vm2397_vm11, 1.0, %v4277_v54 }
 0x279   : > { %v1555_v60 = vpop.f32.mrf.mxu2  ;;  %v1963_v20 = vpop.f32.mrf.mxu0  ;;  %vm2399_vm12 = vcmp.lt.s32.totalorder %v2217_v40, 14 }
 0x27a   : > { %v1595_v22 = vadd.f32 %v1555_v60, %v1391_v19  ;;  %v2505_v32 = vadd.f32 %v2504_v48, %v3926_v45 }
 0x27b   : > { %v1354_v11 = vpop.f32.mrf.mxu1  ;;  %v1759_v23 = vpop.f32.mrf.mxu3 }
 0x27c   : > { %v1392_v58 = vadd.f32 %v1354_v11, %v3693_v41  ;;  %v1799_v39 = vadd.f32 %v1759_v23, %v1595_v22  ;;  %v2506_v25 = vadd.f32 %v2505_v32, %v2479_v50 }
 0x27e   : > { %v2003_v24 = vadd.f32 %v1963_v20, %v1799_v39 }
 0x280   : > { %v2507_v60 = vadd.f32 %v2506_v25, %v2003_v24 }
 0x281   : > { %v1558_v14 = vpop.f32.mrf.mxu2  ;;  %v1966_v62 = vpop.f32.mrf.mxu0 }
 0x282   : > { %v1596_v63 = vadd.f32 %v1558_v14, %v1392_v58 }
 0x283   : > { %v1357_v2 = vpop.f32.mrf.mxu1  ;;  %v1762_v42 = vpop.f32.mrf.mxu3 }
 0x284   : > { %v1800_v51 = vadd.f32 %v1762_v42, %v1596_v63  ;;  %v1393_v19 = vadd.f32 %v1357_v2, %v3699_v29  ;;  %v3940_v63 = vsel %vm2399_vm12, 1.0, %v4277_v54 }
 0x286   : > { %v2004_v41 = vadd.f32 %v1966_v62, %v1800_v51 }
 0x288   : > { %v2481_v56 = vmul.f32 %v3933_v46, %v2004_v41 }
 0x289   : > { %v1561_v15 = vpop.f32.mrf.mxu2  ;;  %v1969_v31 = vpop.f32.mrf.mxu0 }
 0x28a   : > { %v1597_v11 = vadd.f32 %v1561_v15, %v1393_v19  ;;  %v2508_v23 = vadd.f32 %v2507_v60, %v2481_v56  ;;  %v2037_v19 = vadd.s32 216, %v3807_v52 }
 0x28b   : > { %v1360_v22 = vpop.f32.mrf.mxu1  ;;  %v1765_v38 = vpop.f32.mrf.mxu3 }
 0x28c   : > { %v1801_v20 = vadd.f32 %v1765_v38, %v1597_v11  ;;  %v1394_v21 = vadd.f32 %v1360_v22, %v3705_v4 }
 0x28e   : > { %v2005_v10 = vadd.f32 %v1969_v31, %v1801_v20 }
 0x290   : > { %v2509_v58 = vadd.f32 %v2508_v23, %v2005_v10  ;;  %v2231_v23 = vand.u32 15, %v2037_v19 }
 0x291   : > { %v1564_v39 = vpop.f32.mrf.mxu2  ;;  %v1972_v14 = vpop.f32.mrf.mxu0 }
 0x292   : > { %v1598_v62 = vadd.f32 %v1564_v39, %v1394_v21  ;;  %vm2401_vm13 = vcmp.lt.s32.totalorder %v2231_v23, 14 }
 0x293   : > { %v1363_v29 = vpop.f32.mrf.mxu1  ;;  %v1768_v48 = vpop.f32.mrf.mxu3  ;;  %v3947_v39 = vsel %vm2401_vm13, 1.0, %v4277_v54 }
 0x294   : > { %v1802_v50 = vadd.f32 %v1768_v48, %v1598_v62  ;;  %v1395_v42 = vadd.f32 %v1363_v29, %v3711_v43 }
 0x296   : > { %v2006_v2 = vadd.f32 %v1972_v14, %v1802_v50 }
 0x298   : > { %v2483_v32 = vmul.f32 %v3940_v63, %v2006_v2 }
 0x299   : > { %v1567_v51 = vpop.f32.mrf.mxu2  ;;  %v1975_v25 = vpop.f32.mrf.mxu0 }
 0x29a   : > { %v1599_v60 = vadd.f32 %v1567_v51, %v1395_v42  ;;  %v2510_v4 = vadd.f32 %v2509_v58, %v2483_v32 }
 0x29b   : > { %v1771_v56 = vpop.f32.mrf.mxu3  ;;  %v1366_v31 = vpop.f32.mrf.mxu1 }
 0x29c   : > { %v1803_v15 = vadd.f32 %v1771_v56, %v1599_v60  ;;  %v1396_v16 = vadd.f32 %v1366_v31, %v3717_v0 }
 0x29e   : > { %v2007_v11 = vadd.f32 %v1975_v25, %v1803_v15 }
 0x2a0   : > { %v2511_v22 = vadd.f32 %v2510_v4, %v2007_v11 }
 0x2a1   : > { %v1570_v38 = vpop.f32.mrf.mxu2  ;;  %v1978_v40 = vpop.f32.mrf.mxu0 }
 0x2a2   : > { %v1600_v20 = vadd.f32 %v1570_v38, %v1396_v16 }
 0x2a3   : > { %v1774_v43 = vpop.f32.mrf.mxu3 }
 0x2a4   : > { %v1804_v21 = vadd.f32 %v1774_v43, %v1600_v20 }
 0x2a6   : > { %v2008_v58 = vadd.f32 %v1978_v40, %v1804_v21 }
 0x2a8   : > { %v2485_v52 = vmul.f32 %v3947_v39, %v2008_v58 }
 0x2aa   : > { %v2512_v14 = vadd.f32 %v2511_v22, %v2485_v52  ;;  %v4278_v52 = vld [vmem:[#allocation2_spill] sm:$0xff] }
 0x2ac   : > { %v2513_v62 = vrot.slane %v2512_v14, 4 }
 0x2ae   : > { %v2514_v29 = vadd.f32 %v2513_v62, %v2512_v14 }
 0x2b0   : > { %v2515_v48 = vrot.slane %v2514_v29, 2 }
 0x2b2   : > { %v2516_v50 = vadd.f32 %v2515_v48, %v2514_v29 }
 0x2b4   : > { %v2517_v42 = vrot.slane %v2516_v50, 1 }
 0x2b6   : > { %v2518_v0 = vadd.f32 %v2517_v42, %v2516_v50  ;;  %v4279_v50 = vld [vmem:[#allocation3_spill] sm:$0xff] }
 0x2b8   : > { %v3950_v32 = vmul.f32 0.0051020407, %v2518_v0 }
 0x2ba   : > { %v3954_v51 = vsub.f32 %v3729_v18, %v3950_v32  ;;  %v3957_v25 = vsub.f32 %v2003_v24, %v3950_v32  ;;  %v3960_v54 = vsub.f32 %v2004_v41, %v3950_v32  ;;  %v3963_v60 = vsub.f32 %v2005_v10, %v3950_v32 }
 0x2bb   : > { %v3966_v4 = vsub.f32 %v2006_v2, %v3950_v32  ;;  %v3969_v19 = vsub.f32 %v2007_v11, %v3950_v32  ;;  %v3972_v56 = vsub.f32 %v2008_v58, %v3950_v32  ;;  %v3978_v24 = vsub.f32 %v3723_v13, %v3950_v32 }
 0x2bc   : > { %v2549_v18 = vmul.f32 %v3954_v51, %v3954_v51  ;;  %v3982_v41 = vsub.f32 %v3742_v5, %v3950_v32  ;;  %v3986_v10 = vsub.f32 %v3735_v59, %v3950_v32  ;;  %v3991_v15 = vsub.f32 %v3754_v37, %v3950_v32 }
 0x2bd   : > { %v2548_v31 = vmul.f32 %v3978_v24, %v3978_v24  ;;  %v3999_v5 = vsub.f32 %v3748_v49, %v3950_v32  ;;  %v4012_v22 = vsub.f32 %v3760_v34, %v3950_v32  ;;  %v4018_v20 = vsub.f32 %v3778_v12, %v3950_v32 }
 0x2be   : > { %v2577_v2 = vmul.f32 %v3823_v9, %v2549_v18  ;;  %v2551_v13 = vmul.f32 %v3982_v41, %v3982_v41  ;;  %v2550_v59 = vmul.f32 %v3986_v10, %v3986_v10  ;;  %v4005_v9 = vsub.f32 %v3766_v57, %v3950_v32 }
 0x2bf   : > { %v2553_v37 = vmul.f32 %v3991_v15, %v3991_v15  ;;  %v2552_v49 = vmul.f32 %v3999_v5, %v3999_v5  ;;  %v2554_v34 = vmul.f32 %v4012_v22, %v4012_v22  ;;  %v4031_v58 = vsub.f32 %v3788_v7, %v3950_v32 }
 0x2c0   : > { %v2604_v11 = vadd.f32 %v2577_v2, %v2548_v31  ;;  %v2579_v23 = vmul.f32 %v3829_v36, %v2551_v13  ;;  %v2555_v57 = vmul.f32 %v4005_v9, %v4005_v9  ;;  %v4025_v36 = vsub.f32 %v3772_v17, %v3950_v32  ;;  %v4280_v13 = vld [vmem:[#allocation4_spill] sm:$0xff] }
 0x2c1   : > { %v2581_v43 = vmul.f32 %v3842_v6, %v2553_v37  ;;  %v2557_v12 = vmul.f32 %v4018_v20, %v4018_v20  ;;  %v4038_v6 = vsub.f32 %v3784_v28, %v3950_v32  ;;  %v4044_v48 = vsub.f32 %v3801_v44, %v3950_v32 }
 0x2c2   : > { %v2605_v16 = vadd.f32 %v2604_v11, %v2550_v59  ;;  %v2583_v14 = vmul.f32 %v4278_v52, %v2555_v57  ;;  %v2556_v17 = vmul.f32 %v4025_v36, %v4025_v36  ;;  %v2559_v7 = vmul.f32 %v4031_v58, %v4031_v58 }
 0x2c3   : > { %v2585_v42 = vmul.f32 %v4279_v50, %v2557_v12  ;;  %v4051_v18 = vsub.f32 %v3798_v1, %v3950_v32  ;;  %v2558_v28 = vmul.f32 %v4038_v6, %v4038_v6  ;;  %v4057_v31 = vsub.f32 %v3809_v8, %v3950_v32 }
 0x2c4   : > { %v2606_v38 = vadd.f32 %v2605_v16, %v2579_v23  ;;  %v2561_v44 = vmul.f32 %v4044_v48, %v4044_v48  ;;  %v2587_v59 = vmul.f32 %v4280_v13, %v2559_v7  ;;  %v4064_v37 = vsub.f32 %v3804_v27, %v3950_v32 }
 0x2c5   : > { %v2560_v1 = vmul.f32 %v4051_v18, %v4051_v18  ;;  %v4070_v16 = vsub.f32 %v3895_v33, %v3950_v32  ;;  %v2563_v8 = vmul.f32 %v4057_v31, %v4057_v31  ;;  %v4090_v52 = vsub.f32 %v3915_v53, %v3950_v32 }
 0x2c6   : > { %v2607_v40 = vadd.f32 %v2606_v38, %v2552_v49  ;;  %v4281_v49 = vld [vmem:[#allocation5_spill] sm:$0xff]  ;;  %v2562_v27 = vmul.f32 %v4064_v37, %v4064_v37  ;;  %v2573_v13 = vmul.f32 %v3966_v4, %v3966_v4 }
 0x2c7   : > { %v2589_v38 = vmul.f32 %v4281_v49, %v2561_v44  ;;  %v2565_v33 = vmul.f32 %v4070_v16, %v4070_v16  ;;  %v2566_v53 = vmul.f32 %v4090_v52, %v4090_v52  ;;  %v2574_v49 = vmul.f32 %v3969_v19, %v3969_v19 }
 0x2c8   : > { %v2608_v21 = vadd.f32 %v2607_v40, %v2581_v43  ;;  %v4077_v43 = vsub.f32 %v3813_v55, %v3950_v32 }
 0x2ca   : > { %v2609_v62 = vadd.f32 %v2608_v21, %v2554_v34  ;;  %v4083_v34 = vsub.f32 %v3906_v47, %v3950_v32  ;;  %v2591_v21 = vmul.f32 %v3884_v35, %v2563_v8  ;;  %v2564_v55 = vmul.f32 %v4077_v43, %v4077_v43 }
 0x2cb   : > { %v4103_v35 = vsub.f32 %v3926_v45, %v3950_v32 }
 0x2cc   : > { %v2610_v29 = vadd.f32 %v2609_v62, %v2583_v14  ;;  %v4096_v62 = vsub.f32 %v3919_v26, %v3950_v32  ;;  %v2567_v47 = vmul.f32 %v4083_v34, %v4083_v34 }
 0x2ce   : > { %v2611_v0 = vadd.f32 %v2610_v29, %v2556_v17  ;;  %v2593_v17 = vmul.f32 %v3898_v30, %v2565_v33  ;;  %v2569_v50 = vmul.f32 %v4096_v62, %v4096_v62  ;;  %v2595_v26 = vmul.f32 %v3912_v61, %v2567_v47 }
 0x2cf   : > { %v2571_v30 = vmul.f32 %v3960_v54, %v3960_v54 }
 0x2d0   : > { %v2612_v2 = vadd.f32 %v2611_v0, %v2585_v42  ;;  %v2568_v0 = vmul.f32 %v4103_v35, %v4103_v35  ;;  %v2597_v45 = vmul.f32 %v3922_v3, %v2569_v50  ;;  %v2601_v3 = vmul.f32 %v3940_v63, %v2573_v13  ;;  %v2638_v50 = vld [vmem:[%s219_s6] sm:$0x1] }
 0x2d1   : > { %v2599_v61 = vmul.f32 %v3933_v46, %v2571_v30 }
 0x2d2   : > { %v2613_v11 = vadd.f32 %v2612_v2, %v2558_v28  ;;  %v2570_v2 = vmul.f32 %v3957_v25, %v3957_v25 }
 0x2d4   : > { %v2614_v23 = vadd.f32 %v2613_v11, %v2587_v59  ;;  %v2572_v11 = vmul.f32 %v3963_v60, %v3963_v60 }
 0x2d6   : > { %v2615_v57 = vadd.f32 %v2614_v23, %v2560_v1  ;;  %v2575_v23 = vmul.f32 %v3972_v56, %v3972_v56 }
 0x2d8   : > { %v2616_v40 = vadd.f32 %v2615_v57, %v2589_v38  ;;  %v2603_v57 = vmul.f32 %v3947_v39, %v2575_v23 }
 0x2da   : > { %v2617_v12 = vadd.f32 %v2616_v40, %v2562_v27 }
 0x2dc   : > { %v2618_v14 = vadd.f32 %v2617_v12, %v2591_v21 }
 0x2de   : > { %v2619_v29 = vadd.f32 %v2618_v14, %v2564_v55 }
 0x2e0   : > { %v2620_v7 = vadd.f32 %v2619_v29, %v2593_v17 }
 0x2e2   : > { %v2621_v42 = vadd.f32 %v2620_v7, %v2566_v53 }
 0x2e4   : > { %v2622_v28 = vadd.f32 %v2621_v42, %v2595_v26 }
 0x2e6   : > { %v2623_v32 = vadd.f32 %v2622_v28, %v2568_v0 }
 0x2e8   : > { %v2624_v44 = vadd.f32 %v2623_v32, %v2597_v45 }
 0x2ea   : > { %v2625_v59 = vadd.f32 %v2624_v44, %v2570_v2  ;;  %v4146_v2 = vld [vmem:[%s222_s29] ss:$0 sm:$0xff] }
 0x2ec   : > { %v2626_v1 = vadd.f32 %v2625_v59, %v2599_v61 }
 0x2ee   : > { %v2627_v8 = vadd.f32 %v2626_v1, %v2572_v11 }
 0x2f0   : > { %v2628_v38 = vadd.f32 %v2627_v8, %v2601_v3 }
 0x2f2   : > { %v2629_v27 = vadd.f32 %v2628_v38, %v2574_v49 }
 0x2f4   : > { %v2630_v46 = vadd.f32 %v2629_v27, %v2603_v57 }
 0x2f6   : > { %v2631_v40 = vrot.slane %v2630_v46, 4 }
 0x2f8   : > { %v2632_v33 = vadd.f32 %v2631_v40, %v2630_v46 }
 0x2fa   : > { %v2633_v21 = vrot.slane %v2632_v33, 2 }
 0x2fc   : > { %v2634_v12 = vadd.f32 %v2633_v21, %v2632_v33 }
 0x2fe   : > { %v2635_v55 = vrot.slane %v2634_v12, 1 }
 0x300   : > { %v2636_v14 = vadd.f32 %v2635_v55, %v2634_v12 }
 0x302   : > { %v2637_v47 = vmul.f32 0.0051020407, %v2636_v14 }
 0x304   : > { %v2639_v17 = vadd.f32 1e-05, %v2637_v47 }
 0x306   : > { %3096 = vrsqrt.f32 %v2639_v17  ;;  %vm2646_vm15 = vweird.f32 %v2639_v17 }
 0x30c   : > { %v3097_v63 = vpop.eup %3096 }
 0x30d   : > { %v2641_v29 = vmul.f32 %v3097_v63, %v2639_v17  ;;  %vm2647_vm14 = vweird.f32 %v3097_v63 }
 0x30e   : > { %vm2648_vm0 = vmor %vm2646_vm15, %vm2647_vm14 }
 0x30f   : > { %v2642_v53 = vmul.f32 %v3097_v63, %v2641_v29 }
 0x311   : > { %v2643_v7 = vmul.f32 0.5, %v2642_v53 }
 0x313   : > { %v2644_v39 = vsub.f32 1.5, %v2643_v7 }
 0x315   : > { %v2645_v26 = vmul.f32 %v3097_v63, %v2644_v39 }
 0x317   : > { %v2649_v42 = vsel %vm2648_vm0, %v3097_v63, %v2645_v26 }
 0x318   : > { %v2650_v0 = vmul.f32 %v2649_v42, %v2638_v50 }
 0x31a   : > { %v4133_v28 = vperm.slane %v2650_v0, 0 }
 0x31c   : > { %v2654_v30 = vmul.f32 %v4133_v28, %v3978_v24  ;;  %v2655_v45 = vmul.f32 %v4133_v28, %v3954_v51  ;;  %v2656_v32 = vmul.f32 %v4133_v28, %v3986_v10  ;;  %v2657_v44 = vmul.f32 %v4133_v28, %v3982_v41 }
 0x31d   : > { %v2658_v13 = vmul.f32 %v4133_v28, %v3999_v5  ;;  %v2659_v24 = vmul.f32 %v4133_v28, %v3991_v15  ;;  %v2660_v51 = vmul.f32 %v4133_v28, %v4012_v22  ;;  %v2661_v11 = vmul.f32 %v4133_v28, %v4005_v9 }
 0x31e   : > { %v2686_v10 = vadd.f32 %v4146_v2, %v2654_v30  ;;  %v2687_v61 = vadd.f32 %v4146_v2, %v2655_v45  ;;  %v2688_v59 = vadd.f32 %v4146_v2, %v2656_v32  ;;  %v2689_v41 = vadd.f32 %v4146_v2, %v2657_v44 }
 0x31f   : > { %v2662_v5 = vmul.f32 %v4133_v28, %v4025_v36  ;;  %v2690_v15 = vadd.f32 %v4146_v2, %v2658_v13  ;;  %v2663_v22 = vmul.f32 %v4133_v28, %v4018_v20  ;;  %v2664_v1 = vmul.f32 %v4133_v28, %v4038_v6 }
 0x320   : > { %v2691_v9 = vadd.f32 %v4146_v2, %v2659_v24  ;;  %v2692_v23 = vadd.f32 %v4146_v2, %v2660_v51  ;;  %v2714_v36 = vmax.f32 %v2686_v10, 0.0  ;;  %v2715_v3 = vmax.f32 %v2687_v61, 0.0 }
 0x321   : > { %v2716_v8 = vmax.f32 %v2688_v59, 0.0  ;;  %v2665_v49 = vmul.f32 %v4133_v28, %v4031_v58  ;;  %v2693_v38 = vadd.f32 %v4146_v2, %v2661_v11  ;;  %v2717_v57 = vmax.f32 %v2689_v41, 0.0 }
 0x322   : > { %v2666_v20 = vmul.f32 %v4133_v28, %v4051_v18  ;;  %v2694_v6 = vadd.f32 %v4146_v2, %v2662_v5  ;;  %v2718_v27 = vmax.f32 %v2690_v15, 0.0  ;;  %2742 = vst [vmem:[%s4168_s13] sm:$0xff] %v2714_v36  ;;  %v2667_v46 = vmul.f32 %v4133_v28, %v4044_v48 }
 0x323   : > { %v2695_v40 = vadd.f32 %v4146_v2, %v2663_v22  ;;  %v2719_v33 = vmax.f32 %v2691_v9, 0.0  ;;  %2743 = vst [vmem:[%s4168_s13 + $0x8] sm:$0xff] %v2715_v3  ;;  %v2668_v58 = vmul.f32 %v4133_v28, %v4064_v37  ;;  %v2696_v21 = vadd.f32 %v4146_v2, %v2664_v1 }
 0x324   : > { %v2720_v12 = vmax.f32 %v2692_v23, 0.0  ;;  %2744 = vst [vmem:[%s4168_s13 + $0x10] sm:$0xff] %v2716_v8  ;;  %v2669_v18 = vmul.f32 %v4133_v28, %v4057_v31  ;;  %v2697_v55 = vadd.f32 %v4146_v2, %v2665_v49  ;;  %v2721_v14 = vmax.f32 %v2693_v38, 0.0 }
 0x325   : > { %2745 = vst [vmem:[%s4168_s13 + $0x18] sm:$0xff] %v2717_v57  ;;  %v2670_v48 = vmul.f32 %v4133_v28, %v4077_v43  ;;  %v2698_v47 = vadd.f32 %v4146_v2, %v2666_v20  ;;  %v2722_v17 = vmax.f32 %v2694_v6, 0.0  ;;  %v2671_v37 = vmul.f32 %v4133_v28, %v4070_v16 }
 0x326   : > { %2746 = vst [vmem:[%s4168_s13 + $0x20] sm:$0xff] %v2718_v27  ;;  %v2699_v63 = vadd.f32 %v4146_v2, %v2667_v46  ;;  %v2723_v29 = vmax.f32 %v2695_v40, 0.0  ;;  %v2672_v31 = vmul.f32 %v4133_v28, %v4090_v52  ;;  %v2700_v53 = vadd.f32 %v4146_v2, %v2668_v58 }
 0x327   : > { %2747 = vst [vmem:[%s4168_s13 + $0x28] sm:$0xff] %v2719_v33  ;;  %v2724_v7 = vmax.f32 %v2696_v21, 0.0  ;;  %v2673_v43 = vmul.f32 %v4133_v28, %v4083_v34  ;;  %v2701_v39 = vadd.f32 %v4146_v2, %v2669_v18  ;;  %v2725_v50 = vmax.f32 %v2697_v55, 0.0 }
 0x328   : > { %2748 = vst [vmem:[%s4168_s13 + $0x30] sm:$0xff] %v2720_v12  ;;  %v2674_v16 = vmul.f32 %v4133_v28, %v4103_v35  ;;  %v2702_v26 = vadd.f32 %v4146_v2, %v2670_v48  ;;  %v2726_v42 = vmax.f32 %v2698_v47, 0.0  ;;  %v2675_v52 = vmul.f32 %v4133_v28, %v4096_v62 }
 0x329   : > { %2749 = vst [vmem:[%s4168_s13 + $0x38] sm:$0xff] %v2721_v14  ;;  %v2703_v0 = vadd.f32 %v4146_v2, %v2671_v37  ;;  %v2727_v30 = vmax.f32 %v2699_v63, 0.0  ;;  %v2676_v34 = vmul.f32 %v4133_v28, %v3957_v25  ;;  %v2704_v45 = vadd.f32 %v4146_v2, %v2672_v31 }
 0x32a   : > { %2750 = vst [vmem:[%s4168_s13 + $0x40] sm:$0xff] %v2722_v17  ;;  %v2728_v32 = vmax.f32 %v2700_v53, 0.0  ;;  %v2677_v35 = vmul.f32 %v4133_v28, %v3960_v54  ;;  %v2705_v44 = vadd.f32 %v4146_v2, %v2673_v43  ;;  %v2729_v13 = vmax.f32 %v2701_v39, 0.0 }
 0x32b   : > { %2751 = vst [vmem:[%s4168_s13 + $0x48] sm:$0xff] %v2723_v29  ;;  %v2678_v62 = vmul.f32 %v4133_v28, %v3963_v60  ;;  %v2706_v24 = vadd.f32 %v4146_v2, %v2674_v16  ;;  %v2730_v51 = vmax.f32 %v2702_v26, 0.0  ;;  %v2679_v25 = vmul.f32 %v4133_v28, %v3966_v4 }
 0x32c   : > { %2752 = vst [vmem:[%s4168_s13 + $0x50] sm:$0xff] %v2724_v7  ;;  %v2707_v10 = vadd.f32 %v4146_v2, %v2675_v52  ;;  %v2731_v54 = vmax.f32 %v2703_v0, 0.0  ;;  %v2680_v61 = vmul.f32 %v4133_v28, %v3969_v19  ;;  %v2708_v59 = vadd.f32 %v4146_v2, %v2676_v34 }
 0x32d   : > { %2753 = vst [vmem:[%s4168_s13 + $0x58] sm:$0xff] %v2725_v50  ;;  %v2732_v60 = vmax.f32 %v2704_v45, 0.0  ;;  %v2681_v11 = vmul.f32 %v4133_v28, %v3972_v56  ;;  %v2709_v41 = vadd.f32 %v4146_v2, %v2677_v35  ;;  %v2733_v4 = vmax.f32 %v2705_v44, 0.0 }
 0x32e   : > { %2754 = vst [vmem:[%s4168_s13 + $0x60] sm:$0xff] %v2726_v42  ;;  %v2710_v5 = vadd.f32 %v4146_v2, %v2678_v62  ;;  %v2734_v15 = vmax.f32 %v2706_v24, 0.0  ;;  %v2711_v19 = vadd.f32 %v4146_v2, %v2679_v25  ;;  %v2735_v22 = vmax.f32 %v2707_v10, 0.0 }
 0x32f   : > { %2755 = vst [vmem:[%s4168_s13 + $0x68] sm:$0xff] %v2727_v30  ;;  %v2712_v56 = vadd.f32 %v4146_v2, %v2680_v61  ;;  %v2736_v28 = vmax.f32 %v2708_v59, 0.0  ;;  %v2713_v1 = vadd.f32 %v4146_v2, %v2681_v11  ;;  %v2737_v9 = vmax.f32 %v2709_v41, 0.0 }
 0x330   : > { %2756 = vst [vmem:[%s4168_s13 + $0x70] sm:$0xff] %v2728_v32  ;;  %v2738_v23 = vmax.f32 %v2710_v5, 0.0  ;;  %v2739_v36 = vmax.f32 %v2711_v19, 0.0 }
 0x331   : > { %2757 = vst [vmem:[%s4168_s13 + $0x78] sm:$0xff] %v2729_v13  ;;  %v2740_v3 = vmax.f32 %v2712_v56, 0.0  ;;  %v2741_v8 = vmax.f32 %v2713_v1, 0.0 }
 0x332   : > { %2758 = vst [vmem:[%s4168_s13 + $0x80] sm:$0xff] %v2730_v51 }
 0x333   : > { %2759 = vst [vmem:[%s4168_s13 + $0x88] sm:$0xff] %v2731_v54 }
 0x334   : > { %2760 = vst [vmem:[%s4168_s13 + $0x90] sm:$0xff] %v2732_v60 }
 0x335   : > { %2761 = vst [vmem:[%s4168_s13 + $0x98] sm:$0xff] %v2733_v4 }
 0x336   : > { %2762 = vst [vmem:[%s4168_s13 + $0xa0] sm:$0xff] %v2734_v15 }
 0x337   : > { %2763 = vst [vmem:[%s4168_s13 + $0xa8] sm:$0xff] %v2735_v22 }
 0x338   : > { %2764 = vst [vmem:[%s4168_s13 + $0xb0] sm:$0xff] %v2736_v28 }
 0x339   : > { %2765 = vst [vmem:[%s4168_s13 + $0xb8] sm:$0xff] %v2737_v9 }
 0x33a   : > { %2766 = vst [vmem:[%s4168_s13 + $0xc0] sm:$0xff] %v2738_v23 }
 0x33b   : > { %2767 = vst [vmem:[%s4168_s13 + $0xc8] sm:$0xff] %v2739_v36 }
 0x33c   : > { %2768 = vst [vmem:[%s4168_s13 + $0xd0] sm:$0xff] %v2740_v3 }
 0x33d   : > { %2769 = vst [vmem:[%s4168_s13 + $0xd8] sm:$0xff] %v2741_v8 }
 0x33e PF: > { %s14_s15 = sadd.s32 1, %s3104_s15  }
 0x33f   : > { %p11_p6 = scmp.ge.s32.totalorder %s14_s15, 8  }
 0x341   :  { %13 = sbr.rel (!%p11_p6) target bundleno = 1 (0x1), region = 81 }

</bundles_post_ra>
